<compile_context>
chip_gen: v7x
topology: tpu7x:2x2x1
jax: 0.10.0
libtpu: 0.0.40
codegen_flags: <defaults>
</compile_context>

<pallas_src>
import functools

import jax
import jax.numpy as jnp
from jax import lax
from jax.experimental import pallas as pl
from jax.experimental.pallas import tpu as pltpu

_LANES = 128                       # TPU lane width: keep channels lane-dense
_ACT_DTYPE = jnp.bfloat16          # inter-block / HBM activation storage dtype


def _round_up(c, m=_LANES):
    return -(-c // m) * m


def _pick_row_tile(Ho, Wo):
    """Output-row strip size: >= 2 strips when possible, sublane friendly."""
    for t in (8, 4, 2):
        if Ho % t == 0 and Ho // t >= 2 and (t * Wo) % 8 == 0:
            return t
    return Ho


# ----------------------------- fused MBConv kernel ---------------------------

def _mbconv_kernel(x_ref, we_ref, be_ref, wd_ref, bd_ref, wp_ref, bp_ref,
                   o_ref, hp_ref, *, K, stride, pad, Hq, Wq, Ho, Wo, Hh, Wh,
                   row_tile, use_residual):
    """One fused MBConv block; grid = (batch, output-row strip).

    x_ref : (s*s*Hq*Wq, Cin) bf16   phase-split input pixels, resident across
                                    all strips of the current batch element.
    we/be : (Cin, Cmid) bf16, (1, Cmid) f32    1x1 expand (BN folded) + bias
    wd/bd : (K*K, Cmid) bf16, (1, Cmid) f32    depthwise taps (BN folded) + bias
    wp/bp : (Cmid, Cout) bf16, (1, Cout) f32   1x1 project (BN folded) + bias
    o_ref : (row_tile*Wo, Cout)                this strip's output pixels
    hp_ref: (s*s*Hh, Wh, Cmid) f32 VMEM scratch; zero-padded, phase-split
            expanded activation for the whole image (never written to HBM).
    """
    s = stride
    Cmid = we_ref.shape[1]
    T = row_tile

    # ---- strip 0 of each batch element: expand the whole image into VMEM ----
    @pl.when(pl.program_id(1) == 0)
    def _expand():
        # Zero ONLY the padding ring; the interior is fully overwritten below.
        for a in range(s):
            for b in range(s):
                plane = ((a + pad) % s) * s + ((b + pad) % s)
                roff = (a + pad) // s
                coff = (b + pad) // s
                base = plane * Hh
                if roff > 0:
                    hp_ref[pl.ds(base, roff), :, :] = jnp.zeros(
                        (roff, Wh, Cmid), jnp.float32)
                if roff + Hq < Hh:
                    hp_ref[pl.ds(base + roff + Hq, Hh - roff - Hq), :, :] = (
                        jnp.zeros((Hh - roff - Hq, Wh, Cmid), jnp.float32))
                if coff > 0:
                    hp_ref[pl.ds(base, Hh), pl.ds(0, coff), :] = jnp.zeros(
                        (Hh, coff, Cmid), jnp.float32)
                if coff + Wq < Wh:
                    hp_ref[pl.ds(base, Hh),
                           pl.ds(coff + Wq, Wh - coff - Wq), :] = jnp.zeros(
                        (Hh, Wh - coff - Wq, Cmid), jnp.float32)

        # ONE MXU matmul over all phases/pixels (bf16 x bf16 -> f32 acc).
        e_all = jnp.dot(x_ref[...], we_ref[...],
                        preferred_element_type=jnp.float32)
        e_all = jnp.clip(e_all + be_ref[...], 0.0, 6.0)

        # Phase-split stores ("same" zero padding comes from the ring).
        for a in range(s):
            for b in range(s):
                ph = a * s + b
                plane = ((a + pad) % s) * s + ((b + pad) % s)
                roff = (a + pad) // s
                coff = (b + pad) // s
                e_ph = e_all[ph * Hq * Wq:(ph + 1) * Hq * Wq, :]
                hp_ref[pl.ds(plane * Hh + roff, Hq), pl.ds(coff, Wq), :] = (
                    e_ph.reshape(Hq, Wq, Cmid))

    # ---- every strip: KxK depthwise (f32 VPU MACs) + 1x1 project (MXU) ------
    r0 = pl.multiple_of(pl.program_id(1) * T, T)            # first output row
    wd = wd_ref[...].astype(jnp.float32)                    # (K*K, Cmid)
    acc = jnp.zeros((T, Wo, Cmid), jnp.float32)
    for ki in range(K):
        for kj in range(K):
            plane = (ki % s) * s + (kj % s)
            patch = hp_ref[pl.ds(plane * Hh + r0 + ki // s, T),
                           pl.ds(kj // s, Wo), :]            # (T, Wo, Cmid)
            acc = acc + patch * wd[ki * K + kj]
    y = jnp.clip(acc + bd_ref[...], 0.0, 6.0)

    out = jnp.dot(y.reshape(T * Wo, Cmid).astype(wp_ref.dtype), wp_ref[...],
                  preferred_element_type=jnp.float32)
    out = out + bp_ref[...]
    if use_residual:                                         # stride 1, cin==cout
        res = x_ref[pl.ds(pl.multiple_of(r0 * Wq, T * Wq), T * Wq), :]
        out = out + res.astype(jnp.float32)
    o_ref[...] = out.astype(o_ref.dtype)


# --------------------------------- wrapper -----------------------------------

def mbconv_block(x, p, *, K, stride, use_residual):
    """Fused MBConv block. x: (N, H, W, Cin) NHWC, channels lane-padded."""
    N, H, W, Cin = x.shape
    Cmid = p["w_exp"].shape[1]
    Cout = p["w_proj"].shape[1]
    pad = K // 2
    s = stride
    assert s == 1 or (H % s == 0 and W % s == 0), (H, W, s)
    Ho = (H + 2 * pad - K) // s + 1
    Wo = (W + 2 * pad - K) // s + 1

    if s == 1:
        Hq, Wq = H, W
        x_ph = x.reshape(N, H * W, Cin)
    else:
        Hq, Wq = H // s, W // s
        # Phase-split by (h % s, w % s): every depthwise tap in the kernel is a
        # contiguous VMEM slice (no strided loads, no padding pass over the
        # 4x-wide expanded activation).
        x_ph = (x.reshape(N, Hq, s, Wq, s, Cin)
                 .transpose(0, 2, 4, 1, 3, 5)
                 .reshape(N, s * s * Hq * Wq, Cin))

    # Phase-plane extents: cover both the expand stores and all K*K tap reads.
    Hh = max((K - 1) // s + Ho, (s - 1 + pad) // s + Hq)
    Wh = max((K - 1) // s + Wo, (s - 1 + pad) // s + Wq)

    T = _pick_row_tile(Ho, Wo)
    n_strips = Ho // T

    kernel = functools.partial(
        _mbconv_kernel, K=K, stride=s, pad=pad, Hq=Hq, Wq=Wq, Ho=Ho, Wo=Wo,
        Hh=Hh, Wh=Wh, row_tile=T, use_residual=use_residual)

    out = pl.pallas_call(
        kernel,
        grid=(N, n_strips),
        in_specs=[
            # x stays resident across all strips of a batch element (its block
            # index does not change along the strip axis -> no re-DMA).
            pl.BlockSpec((None, s * s * Hq * Wq, Cin), lambda n, t: (n, 0, 0)),
            pl.BlockSpec((Cin, Cmid), lambda n, t: (0, 0)),
            pl.BlockSpec((1, Cmid), lambda n, t: (0, 0)),
            pl.BlockSpec((K * K, Cmid), lambda n, t: (0, 0)),
            pl.BlockSpec((1, Cmid), lambda n, t: (0, 0)),
            pl.BlockSpec((Cmid, Cout), lambda n, t: (0, 0)),
            pl.BlockSpec((1, Cout), lambda n, t: (0, 0)),
        ],
        out_specs=pl.BlockSpec((None, T * Wo, Cout), lambda n, t: (n, t, 0)),
        out_shape=jax.ShapeDtypeStruct((N, Ho * Wo, Cout), x.dtype),
        scratch_shapes=[pltpu.VMEM((s * s * Hh, Wh, Cmid), jnp.float32)],
        compiler_params=pltpu.CompilerParams(
            dimension_semantics=("parallel", "arbitrary"),
            vmem_limit_bytes=48 * 1024 * 1024),
    )(x_ph, p["w_exp"], p["b_exp"], p["w_dw"], p["b_dw"],
      p["w_proj"], p["b_proj"])
    return out.reshape(N, Ho, Wo, Cout)


# --------------------------- parameters (BN folded) ---------------------------

def _fold_bn(gamma, beta, mean, var, eps=1e-5):
    scale = gamma / jnp.sqrt(var + eps)
    return scale, beta - mean * scale


def init_mbconv_params(key, cin, cout, K, expand, *, w_dtype=jnp.bfloat16):
    """Synthetic params (PyTorch conv bias=False, BN at init, eval semantics).

    BN scale is folded into the conv weights on the host; kernels only add a
    per-channel f32 bias. Channel dims are zero-padded to multiples of 128 so
    stores/matmuls are lane-dense; weights are stored in bf16.
    """
    cmid = cin * expand
    cin_p, cmid_p, cout_p = _round_up(cin), _round_up(cmid), _round_up(cout)
    k1, k2, k3 = jax.random.split(key, 3)
    w_exp = jax.random.normal(k1, (cin, cmid), jnp.float32) * 0.1
    w_dw = jax.random.normal(k2, (K, K, cmid), jnp.float32) * 0.1
    w_proj = jax.random.normal(k3, (cmid, cout), jnp.float32) * 0.1

    ones = lambda c: jnp.ones((c,), jnp.float32)
    zeros = lambda c: jnp.zeros((c,), jnp.float32)
    s_e, b_e = _fold_bn(ones(cmid), zeros(cmid), zeros(cmid), ones(cmid))
    s_d, b_d = _fold_bn(ones(cmid), zeros(cmid), zeros(cmid), ones(cmid))
    s_p, b_p = _fold_bn(ones(cout), zeros(cout), zeros(cout), ones(cout))

    def pad2(w, r, c):
        return jnp.pad(w, ((0, r - w.shape[0]), (0, c - w.shape[1])))

    return {
        "w_exp": pad2(w_exp * s_e[None, :], cin_p, cmid_p).astype(w_dtype),
        "b_exp": jnp.pad(b_e, (0, cmid_p - cmid)).reshape(1, cmid_p),
        "w_dw": pad2((w_dw * s_d[None, None, :]).reshape(K * K, cmid),
                     K * K, cmid_p).astype(w_dtype),
        "b_dw": jnp.pad(b_d, (0, cmid_p - cmid)).reshape(1, cmid_p),
        "w_proj": pad2(w_proj * s_p[None, :], cmid_p, cout_p).astype(w_dtype),
        "b_proj": jnp.pad(b_p, (0, cout_p - cout)).reshape(1, cout_p),
    }


# ----------------------------------- Stage ------------------------------------

@functools.partial(jax.jit,
                   static_argnames=("strides", "residuals", "k", "out_channels"))
def _stage_forward(x_nchw, params, strides, residuals, k, out_channels):
    x = jnp.transpose(x_nchw, (0, 2, 3, 1))        # NCHW -> NHWC (C on lanes)
    cin_p = params[0]["w_exp"].shape[0]
    x = jnp.pad(x, ((0, 0), (0, 0), (0, 0), (0, cin_p - x.shape[-1])))
    x = x.astype(_ACT_DTYPE)                       # bf16 inter-block HBM traffic
    for p, s, r in zip(params, strides, residuals):
        x = mbconv_block(x, p, K=k, stride=s, use_residual=r)
    x = x[..., :out_channels].astype(jnp.float32)
    return jnp.transpose(x, (0, 3, 1, 2))          # back to NCHW


class Stage:
    """JAX/Pallas mirror of SpaceEvo Stage.forward (active_depth = max_depth)."""

    def __init__(self, max_cin, width_list, depth_list, stride, *,
                 K=3, expand=4, key):
        self.width_list = list(width_list)
        self.depth_list = list(depth_list)
        self.max_depth = max(depth_list)
        self.max_width = max(width_list)
        self.K = K
        self.active_depth = self.max_depth          # Stage default
        self.block_params = []
        self.block_strides = []
        self.block_residual = []
        keys = jax.random.split(key, self.max_depth)
        for i in range(self.max_depth):
            cin = max_cin if i == 0 else self.max_width
            s = stride if i == 0 else 1
            self.block_params.append(
                init_mbconv_params(keys[i], cin, self.max_width, K, expand))
            self.block_strides.append(s)
            self.block_residual.append(s == 1 and cin == self.max_width)

    def __call__(self, x_nchw):
        d = self.active_depth
        return _stage_forward(x_nchw, tuple(self.block_params[:d]),
                              strides=tuple(self.block_strides[:d]),
                              residuals=tuple(self.block_residual[:d]),
                              k=self.K, out_channels=self.max_width)


# --------------------------- pure-JAX reference -------------------------------

def _ref_block(x, p, K, stride, use_residual):
    pad = K // 2
    cmid = p["b_exp"].shape[1]
    hi = lax.Precision.HIGHEST
    w_exp = p["w_exp"].astype(jnp.float32)
    w_dw = p["w_dw"].astype(jnp.float32).reshape(K, K, 1, cmid)
    w_proj = p["w_proj"].astype(jnp.float32)
    e = jnp.einsum("nhwc,cd->nhwd", x, w_exp, precision=hi) + p["b_exp"][0]
    e = jnp.clip(e, 0.0, 6.0)
    d = lax.conv_general_dilated(
        e, w_dw, window_strides=(stride, stride),
        padding=((pad, pad), (pad, pad)),
        dimension_numbers=("NHWC", "HWIO", "NHWC"),
        feature_group_count=cmid, precision=hi)
    d = jnp.clip(d + p["b_dw"][0], 0.0, 6.0)
    out = (jnp.einsum("nhwc,cd->nhwd", d, w_proj, precision=hi)
           + p["b_proj"][0])
    if use_residual:
        out = out + x
    return out


def _stage_forward_ref(x_nchw, params, strides, residuals, k, out_channels):
    x = jnp.transpose(x_nchw, (0, 2, 3, 1))
    cin_p = params[0]["w_exp"].shape[0]
    x = jnp.pad(x, ((0, 0), (0, 0), (0, 0), (0, cin_p - x.shape[-1])))
    for p, s, r in zip(params, strides, residuals):
        x = _ref_block(x, p, k, s, r)
    x = x[..., :out_channels]
    return jnp.transpose(x, (0, 3, 1, 2))


# ------------------------------------ main -------------------------------------

if __name__ == "__main__":
    key = jax.random.PRNGKey(0)
    k_x, k_p = jax.random.split(key)

    # Small shapes consistent with the module: N=2, Cin=4, 16x16 spatial (NCHW).
    x = jax.random.normal(k_x, (2, 4, 16, 16), jnp.float32)

    stage = Stage(max_cin=4, width_list=[8], depth_list=[1, 2], stride=2,
                  K=3, expand=4, key=k_p)

    y = jax.block_until_ready(stage(x))
    assert y.shape == (2, 8, 8, 8), y.shape        # (N, max_width, H/2, W/2)
    assert bool(jnp.all(jnp.isfinite(y)))

    # Numerical check against a pure-JAX f32 reference of the same stage.
    # Tolerance covers bf16 activation storage + bf16 MXU accumulation order.
    y_ref = _stage_forward_ref(x, tuple(stage.block_params),
                               tuple(stage.block_strides),
                               tuple(stage.block_residual),
                               stage.K, stage.max_width)
    err = float(jnp.max(jnp.abs(y - y_ref)))
    assert err < 2e-2, f"max abs err {err}"

    print("KERNEL_OK")
</pallas_src>

<mosaic_0001>
module attributes {stable_mosaic.version = 11 : i64} {
  func.func @_mbconv_kernel(%arg0: i32, %arg1: i32, %arg2: memref<1x64x128xbf16, #tpu.memory_space<vmem>>, %arg3: memref<128x128xbf16, #tpu.memory_space<vmem>>, %arg4: memref<1x128xf32, #tpu.memory_space<vmem>>, %arg5: memref<9x128xbf16, #tpu.memory_space<vmem>>, %arg6: memref<1x128xf32, #tpu.memory_space<vmem>>, %arg7: memref<128x128xbf16, #tpu.memory_space<vmem>>, %arg8: memref<1x128xf32, #tpu.memory_space<vmem>>, %arg9: memref<1x32x128xbf16, #tpu.memory_space<vmem>>, %arg10: memref<10x10x128xf32, #tpu.memory_space<vmem>>) attributes {dimension_semantics = [#tpu.dimension_semantics<parallel>, #tpu.dimension_semantics<arbitrary>], iteration_bounds = array<i64: 2, 2>, scalar_prefetch = 0 : i64, scratch_operands = 1 : i64, tpu.core_type = #tpu.core_type<tc>, window_params = [{transform_indices = @transform_0, window_bounds = array<i64: 1, 64, 128>}, {pipeline_mode = #tpu.pipeline_mode<synchronous>, transform_indices = @transform_1, window_bounds = array<i64: 128, 128>}, {pipeline_mode = #tpu.pipeline_mode<synchronous>, transform_indices = @transform_2, window_bounds = array<i64: 1, 128>}, {pipeline_mode = #tpu.pipeline_mode<synchronous>, transform_indices = @transform_3, window_bounds = array<i64: 9, 128>}, {pipeline_mode = #tpu.pipeline_mode<synchronous>, transform_indices = @transform_4, window_bounds = array<i64: 1, 128>}, {pipeline_mode = #tpu.pipeline_mode<synchronous>, transform_indices = @transform_5, window_bounds = array<i64: 128, 128>}, {pipeline_mode = #tpu.pipeline_mode<synchronous>, transform_indices = @transform_6, window_bounds = array<i64: 1, 128>}, {transform_indices = @transform_7, window_bounds = array<i64: 1, 32, 128>}]} {
    %c0_i32 = arith.constant 0 : i32
    %0 = arith.cmpi eq, %arg1, %c0_i32 : i32
    %1 = arith.extui %0 : i1 to i32
    %c0_i32_0 = arith.constant 0 : i32
    %2 = arith.cmpi ne, %1, %c0_i32_0 : i32
    scf.if %2 {
      %cst_48 = arith.constant 0.000000e+00 : f32
      %124 = vector.broadcast %cst_48 : f32 to vector<1x10x128xf32>
      %c0_49 = arith.constant 0 : index
      %c0_50 = arith.constant 0 : index
      %c0_51 = arith.constant 0 : index
      %125 = vector.load %arg10[%c0_49, %c0_50, %c0_51] : memref<10x10x128xf32, #tpu.memory_space<vmem>>, vector<1x10x128xf32>
      tpu.vector_store %arg10[%c0_49, %c0_50, %c0_51], %124 {strides = array<i32>} : memref<10x10x128xf32, #tpu.memory_space<vmem>>, vector<1x10x128xf32>,
      %cst_52 = arith.constant 0.000000e+00 : f32
      %126 = vector.broadcast %cst_52 : f32 to vector<1x10x128xf32>
      %c9 = arith.constant 9 : index
      %c0_53 = arith.constant 0 : index
      %c0_54 = arith.constant 0 : index
      %127 = vector.load %arg10[%c9, %c0_53, %c0_54] : memref<10x10x128xf32, #tpu.memory_space<vmem>>, vector<1x10x128xf32>
      tpu.vector_store %arg10[%c9, %c0_53, %c0_54], %126 {strides = array<i32>} : memref<10x10x128xf32, #tpu.memory_space<vmem>>, vector<1x10x128xf32>,
      %cst_55 = arith.constant 0.000000e+00 : f32
      %128 = vector.broadcast %cst_55 : f32 to vector<10x1x128xf32>
      %c0_56 = arith.constant 0 : index
      %c0_57 = arith.constant 0 : index
      %c0_58 = arith.constant 0 : index
      %129 = vector.load %arg10[%c0_56, %c0_57, %c0_58] : memref<10x10x128xf32, #tpu.memory_space<vmem>>, vector<10x1x128xf32>
      tpu.vector_store %arg10[%c0_56, %c0_57, %c0_58], %128 {strides = array<i32>} : memref<10x10x128xf32, #tpu.memory_space<vmem>>, vector<10x1x128xf32>,
      %cst_59 = arith.constant 0.000000e+00 : f32
      %130 = vector.broadcast %cst_59 : f32 to vector<10x1x128xf32>
      %c0_60 = arith.constant 0 : index
      %c9_61 = arith.constant 9 : index
      %c0_62 = arith.constant 0 : index
      %131 = vector.load %arg10[%c0_60, %c9_61, %c0_62] : memref<10x10x128xf32, #tpu.memory_space<vmem>>, vector<10x1x128xf32>
      tpu.vector_store %arg10[%c0_60, %c9_61, %c0_62], %130 {strides = array<i32>} : memref<10x10x128xf32, #tpu.memory_space<vmem>>, vector<10x1x128xf32>,
      %c0_63 = arith.constant 0 : index
      %c0_64 = arith.constant 0 : index
      %c0_65 = arith.constant 0 : index
      %132 = vector.load %arg2[%c0_63, %c0_64, %c0_65] : memref<1x64x128xbf16, #tpu.memory_space<vmem>>, vector<1x64x128xbf16>
      %133 = vector.shape_cast %132 : vector<1x64x128xbf16> to vector<64x128xbf16>
      %c0_66 = arith.constant 0 : index
      %c0_67 = arith.constant 0 : index
      %134 = vector.load %arg3[%c0_66, %c0_67] : memref<128x128xbf16, #tpu.memory_space<vmem>>, vector<128x128xbf16>
      %cst_68 = arith.constant dense<0.000000e+00> : vector<64x128xf32>
      %135 = tpu.matmul %133, %134, %cst_68 {dimension_numbers = #tpu.dot_dimension_numbers<[1], [0], [0], [1], [0, 0, 1, 1], [], []>} : vector<64x128xbf16>, vector<128x128xbf16>, vector<64x128xf32> -> vector<64x128xf32>
      %c0_69 = arith.constant 0 : index
      %c0_70 = arith.constant 0 : index
      %136 = vector.load %arg4[%c0_69, %c0_70] : memref<1x128xf32, #tpu.memory_space<vmem>>, vector<1x128xf32>
      %137 = vector.broadcast %136 : vector<1x128xf32> to vector<64x128xf32>
      %138 = arith.addf %135, %137 : vector<64x128xf32>
      %cst_71 = arith.constant 0.000000e+00 : f32
      %cst_72 = arith.constant 6.000000e+00 : f32
      %139 = vector.broadcast %cst_71 : f32 to vector<64x128xf32>
      %140 = arith.maximumf %139, %138 : vector<64x128xf32>
      %141 = vector.broadcast %cst_72 : f32 to vector<64x128xf32>
      %142 = arith.minimumf %141, %140 : vector<64x128xf32>
      %143 = vector.shape_cast %142 : vector<64x128xf32> to vector<8x8x128xf32>
      %c1_73 = arith.constant 1 : index
      %c1_74 = arith.constant 1 : index
      %c0_75 = arith.constant 0 : index
      %144 = vector.load %arg10[%c1_73, %c1_74, %c0_75] : memref<10x10x128xf32, #tpu.memory_space<vmem>>, vector<8x8x128xf32>
      tpu.vector_store %arg10[%c1_73, %c1_74, %c0_75], %143 {strides = array<i32>} : memref<10x10x128xf32, #tpu.memory_space<vmem>>, vector<8x8x128xf32>,
    } else {
    }
    %c4_i32 = arith.constant 4 : i32
    %3 = arith.muli %arg1, %c4_i32 : i32
    %4 = tpu.assume_multiple %3, 4 : i32
    %c0 = arith.constant 0 : index
    %c0_1 = arith.constant 0 : index
    %5 = vector.load %arg5[%c0, %c0_1] : memref<9x128xbf16, #tpu.memory_space<vmem>>, vector<9x128xbf16>
    %6 = arith.extf %5 : vector<9x128xbf16> to vector<9x128xf32>
    %cst = arith.constant 0.000000e+00 : f32
    %7 = vector.broadcast %cst : f32 to vector<4x8x128xf32>
    %c0_i32_2 = arith.constant 0 : i32
    %8 = arith.addi %c0_i32_2, %4 : i32
    %c0_i32_3 = arith.constant 0 : i32
    %9 = arith.addi %8, %c0_i32_3 : i32
    %10 = arith.index_cast %9 : i32 to index
    %c0_4 = arith.constant 0 : index
    %c0_5 = arith.constant 0 : index
    %11 = vector.load %arg10[%10, %c0_4, %c0_5] : memref<10x10x128xf32, #tpu.memory_space<vmem>>, vector<4x8x128xf32>
    %12 = vector.extract_strided_slice %6 {offsets = [0, 0], sizes = [1, 128], strides = [1, 1]} : vector<9x128xf32> to vector<1x128xf32>
    %13 = vector.shape_cast %12 : vector<1x128xf32> to vector<128xf32>
    %14 = vector.shape_cast %13 : vector<128xf32> to vector<1x1x128xf32>
    %15 = vector.broadcast %14 : vector<1x1x128xf32> to vector<4x8x128xf32>
    %16 = arith.mulf %11, %15 : vector<4x8x128xf32>
    %17 = arith.addf %7, %16 : vector<4x8x128xf32>
    %c0_i32_6 = arith.constant 0 : i32
    %18 = arith.addi %c0_i32_6, %4 : i32
    %c0_i32_7 = arith.constant 0 : i32
    %19 = arith.addi %18, %c0_i32_7 : i32
    %20 = arith.index_cast %19 : i32 to index
    %c1 = arith.constant 1 : index
    %c0_8 = arith.constant 0 : index
    %21 = vector.load %arg10[%20, %c1, %c0_8] : memref<10x10x128xf32, #tpu.memory_space<vmem>>, vector<4x8x128xf32>
    %22 = vector.extract_strided_slice %6 {offsets = [1, 0], sizes = [1, 128], strides = [1, 1]} : vector<9x128xf32> to vector<1x128xf32>
    %23 = vector.shape_cast %22 : vector<1x128xf32> to vector<128xf32>
    %24 = vector.shape_cast %23 : vector<128xf32> to vector<1x1x128xf32>
    %25 = vector.broadcast %24 : vector<1x1x128xf32> to vector<4x8x128xf32>
    %26 = arith.mulf %21, %25 : vector<4x8x128xf32>
    %27 = arith.addf %17, %26 : vector<4x8x128xf32>
    %c0_i32_9 = arith.constant 0 : i32
    %28 = arith.addi %c0_i32_9, %4 : i32
    %c0_i32_10 = arith.constant 0 : i32
    %29 = arith.addi %28, %c0_i32_10 : i32
    %30 = arith.index_cast %29 : i32 to index
    %c2 = arith.constant 2 : index
    %c0_11 = arith.constant 0 : index
    %31 = vector.load %arg10[%30, %c2, %c0_11] : memref<10x10x128xf32, #tpu.memory_space<vmem>>, vector<4x8x128xf32>
    %32 = vector.extract_strided_slice %6 {offsets = [2, 0], sizes = [1, 128], strides = [1, 1]} : vector<9x128xf32> to vector<1x128xf32>
    %33 = vector.shape_cast %32 : vector<1x128xf32> to vector<128xf32>
    %34 = vector.shape_cast %33 : vector<128xf32> to vector<1x1x128xf32>
    %35 = vector.broadcast %34 : vector<1x1x128xf32> to vector<4x8x128xf32>
    %36 = arith.mulf %31, %35 : vector<4x8x128xf32>
    %37 = arith.addf %27, %36 : vector<4x8x128xf32>
    %c0_i32_12 = arith.constant 0 : i32
    %38 = arith.addi %c0_i32_12, %4 : i32
    %c1_i32 = arith.constant 1 : i32
    %39 = arith.addi %38, %c1_i32 : i32
    %40 = arith.index_cast %39 : i32 to index
    %c0_13 = arith.constant 0 : index
    %c0_14 = arith.constant 0 : index
    %41 = vector.load %arg10[%40, %c0_13, %c0_14] : memref<10x10x128xf32, #tpu.memory_space<vmem>>, vector<4x8x128xf32>
    %42 = vector.extract_strided_slice %6 {offsets = [3, 0], sizes = [1, 128], strides = [1, 1]} : vector<9x128xf32> to vector<1x128xf32>
    %43 = vector.shape_cast %42 : vector<1x128xf32> to vector<128xf32>
    %44 = vector.shape_cast %43 : vector<128xf32> to vector<1x1x128xf32>
    %45 = vector.broadcast %44 : vector<1x1x128xf32> to vector<4x8x128xf32>
    %46 = arith.mulf %41, %45 : vector<4x8x128xf32>
    %47 = arith.addf %37, %46 : vector<4x8x128xf32>
    %c0_i32_15 = arith.constant 0 : i32
    %48 = arith.addi %c0_i32_15, %4 : i32
    %c1_i32_16 = arith.constant 1 : i32
    %49 = arith.addi %48, %c1_i32_16 : i32
    %50 = arith.index_cast %49 : i32 to index
    %c1_17 = arith.constant 1 : index
    %c0_18 = arith.constant 0 : index
    %51 = vector.load %arg10[%50, %c1_17, %c0_18] : memref<10x10x128xf32, #tpu.memory_space<vmem>>, vector<4x8x128xf32>
    %52 = vector.extract_strided_slice %6 {offsets = [4, 0], sizes = [1, 128], strides = [1, 1]} : vector<9x128xf32> to vector<1x128xf32>
    %53 = vector.shape_cast %52 : vector<1x128xf32> to vector<128xf32>
    %54 = vector.shape_cast %53 : vector<128xf32> to vector<1x1x128xf32>
    %55 = vector.broadcast %54 : vector<1x1x128xf32> to vector<4x8x128xf32>
    %56 = arith.mulf %51, %55 : vector<4x8x128xf32>
    %57 = arith.addf %47, %56 : vector<4x8x128xf32>
    %c0_i32_19 = arith.constant 0 : i32
    %58 = arith.addi %c0_i32_19, %4 : i32
    %c1_i32_20 = arith.constant 1 : i32
    %59 = arith.addi %58, %c1_i32_20 : i32
    %60 = arith.index_cast %59 : i32 to index
    %c2_21 = arith.constant 2 : index
    %c0_22 = arith.constant 0 : index
    %61 = vector.load %arg10[%60, %c2_21, %c0_22] : memref<10x10x128xf32, #tpu.memory_space<vmem>>, vector<4x8x128xf32>
    %62 = vector.extract_strided_slice %6 {offsets = [5, 0], sizes = [1, 128], strides = [1, 1]} : vector<9x128xf32> to vector<1x128xf32>
    %63 = vector.shape_cast %62 : vector<1x128xf32> to vector<128xf32>
    %64 = vector.shape_cast %63 : vector<128xf32> to vector<1x1x128xf32>
    %65 = vector.broadcast %64 : vector<1x1x128xf32> to vector<4x8x128xf32>
    %66 = arith.mulf %61, %65 : vector<4x8x128xf32>
    %67 = arith.addf %57, %66 : vector<4x8x128xf32>
    %c0_i32_23 = arith.constant 0 : i32
    %68 = arith.addi %c0_i32_23, %4 : i32
    %c2_i32 = arith.constant 2 : i32
    %69 = arith.addi %68, %c2_i32 : i32
    %70 = arith.index_cast %69 : i32 to index
    %c0_24 = arith.constant 0 : index
    %c0_25 = arith.constant 0 : index
    %71 = vector.load %arg10[%70, %c0_24, %c0_25] : memref<10x10x128xf32, #tpu.memory_space<vmem>>, vector<4x8x128xf32>
    %72 = vector.extract_strided_slice %6 {offsets = [6, 0], sizes = [1, 128], strides = [1, 1]} : vector<9x128xf32> to vector<1x128xf32>
    %73 = vector.shape_cast %72 : vector<1x128xf32> to vector<128xf32>
    %74 = vector.shape_cast %73 : vector<128xf32> to vector<1x1x128xf32>
    %75 = vector.broadcast %74 : vector<1x1x128xf32> to vector<4x8x128xf32>
    %76 = arith.mulf %71, %75 : vector<4x8x128xf32>
    %77 = arith.addf %67, %76 : vector<4x8x128xf32>
    %c0_i32_26 = arith.constant 0 : i32
    %78 = arith.addi %c0_i32_26, %4 : i32
    %c2_i32_27 = arith.constant 2 : i32
    %79 = arith.addi %78, %c2_i32_27 : i32
    %80 = arith.index_cast %79 : i32 to index
    %c1_28 = arith.constant 1 : index
    %c0_29 = arith.constant 0 : index
    %81 = vector.load %arg10[%80, %c1_28, %c0_29] : memref<10x10x128xf32, #tpu.memory_space<vmem>>, vector<4x8x128xf32>
    %82 = vector.extract_strided_slice %6 {offsets = [7, 0], sizes = [1, 128], strides = [1, 1]} : vector<9x128xf32> to vector<1x128xf32>
    %83 = vector.shape_cast %82 : vector<1x128xf32> to vector<128xf32>
    %84 = vector.shape_cast %83 : vector<128xf32> to vector<1x1x128xf32>
    %85 = vector.broadcast %84 : vector<1x1x128xf32> to vector<4x8x128xf32>
    %86 = arith.mulf %81, %85 : vector<4x8x128xf32>
    %87 = arith.addf %77, %86 : vector<4x8x128xf32>
    %c0_i32_30 = arith.constant 0 : i32
    %88 = arith.addi %c0_i32_30, %4 : i32
    %c2_i32_31 = arith.constant 2 : i32
    %89 = arith.addi %88, %c2_i32_31 : i32
    %90 = arith.index_cast %89 : i32 to index
    %c2_32 = arith.constant 2 : index
    %c0_33 = arith.constant 0 : index
    %91 = vector.load %arg10[%90, %c2_32, %c0_33] : memref<10x10x128xf32, #tpu.memory_space<vmem>>, vector<4x8x128xf32>
    %92 = vector.extract_strided_slice %6 {offsets = [8, 0], sizes = [1, 128], strides = [1, 1]} : vector<9x128xf32> to vector<1x128xf32>
    %93 = vector.shape_cast %92 : vector<1x128xf32> to vector<128xf32>
    %94 = vector.shape_cast %93 : vector<128xf32> to vector<1x1x128xf32>
    %95 = vector.broadcast %94 : vector<1x1x128xf32> to vector<4x8x128xf32>
    %96 = arith.mulf %91, %95 : vector<4x8x128xf32>
    %97 = arith.addf %87, %96 : vector<4x8x128xf32>
    %c0_34 = arith.constant 0 : index
    %c0_35 = arith.constant 0 : index
    %98 = vector.load %arg6[%c0_34, %c0_35] : memref<1x128xf32, #tpu.memory_space<vmem>>, vector<1x128xf32>
    %99 = vector.shape_cast %98 : vector<1x128xf32> to vector<1x1x128xf32>
    %100 = vector.broadcast %99 : vector<1x1x128xf32> to vector<4x8x128xf32>
    %101 = arith.addf %97, %100 : vector<4x8x128xf32>
    %cst_36 = arith.constant 0.000000e+00 : f32
    %cst_37 = arith.constant 6.000000e+00 : f32
    %102 = vector.broadcast %cst_36 : f32 to vector<4x8x128xf32>
    %103 = arith.maximumf %102, %101 : vector<4x8x128xf32>
    %104 = vector.broadcast %cst_37 : f32 to vector<4x8x128xf32>
    %105 = arith.minimumf %104, %103 : vector<4x8x128xf32>
    %106 = vector.shape_cast %105 : vector<4x8x128xf32> to vector<32x128xf32>
    %107 = arith.truncf %106 : vector<32x128xf32> to vector<32x128xbf16>
    %c0_38 = arith.constant 0 : index
    %c0_39 = arith.constant 0 : index
    %108 = vector.load %arg7[%c0_38, %c0_39] : memref<128x128xbf16, #tpu.memory_space<vmem>>, vector<128x128xbf16>
    %cst_40 = arith.constant dense<0.000000e+00> : vector<32x128xf32>
    %109 = tpu.matmul %107, %108, %cst_40 {dimension_numbers = #tpu.dot_dimension_numbers<[1], [0], [0], [1], [0, 0, 1, 1], [], []>} : vector<32x128xbf16>, vector<128x128xbf16>, vector<32x128xf32> -> vector<32x128xf32>
    %c0_41 = arith.constant 0 : index
    %c0_42 = arith.constant 0 : index
    %110 = vector.load %arg8[%c0_41, %c0_42] : memref<1x128xf32, #tpu.memory_space<vmem>>, vector<1x128xf32>
    %111 = vector.broadcast %110 : vector<1x128xf32> to vector<32x128xf32>
    %112 = arith.addf %109, %111 : vector<32x128xf32>
    %c8_i32 = arith.constant 8 : i32
    %113 = arith.muli %4, %c8_i32 : i32
    %114 = tpu.assume_multiple %113, 32 : i32
    %c0_43 = arith.constant 0 : index
    %115 = arith.index_cast %114 : i32 to index
    %c0_44 = arith.constant 0 : index
    %116 = vector.load %arg2[%c0_43, %115, %c0_44] : memref<1x64x128xbf16, #tpu.memory_space<vmem>>, vector<1x32x128xbf16>
    %117 = vector.shape_cast %116 : vector<1x32x128xbf16> to vector<32x128xbf16>
    %118 = arith.extf %117 : vector<32x128xbf16> to vector<32x128xf32>
    %119 = arith.addf %112, %118 : vector<32x128xf32>
    %120 = arith.truncf %119 : vector<32x128xf32> to vector<32x128xbf16>
    %c0_45 = arith.constant 0 : index
    %c0_46 = arith.constant 0 : index
    %c0_47 = arith.constant 0 : index
    %121 = vector.load %arg9[%c0_45, %c0_46, %c0_47] : memref<1x32x128xbf16, #tpu.memory_space<vmem>>, vector<1x32x128xbf16>
    %122 = vector.shape_cast %121 : vector<1x32x128xbf16> to vector<32x128xbf16>
    %123 = vector.shape_cast %120 : vector<32x128xbf16> to vector<1x32x128xbf16>
    tpu.vector_store %arg9[%c0_45, %c0_46, %c0_47], %123 {strides = array<i32>} : memref<1x32x128xbf16, #tpu.memory_space<vmem>>, vector<1x32x128xbf16>,
    return
  }
  func.func @transform_0(%arg0: i32, %arg1: i32) -> (i32, i32, i32) {
    %c0_i32 = arith.constant 0 : i32
    %c0_i32_0 = arith.constant 0 : i32
    %c0_i32_1 = arith.constant 0 : i32
    return %arg0, %c0_i32, %c0_i32_0 : i32, i32, i32
  }
  func.func @transform_1(%arg0: i32, %arg1: i32) -> (i32, i32) {
    %c0_i32 = arith.constant 0 : i32
    %c0_i32_0 = arith.constant 0 : i32
    %c0_i32_1 = arith.constant 0 : i32
    return %c0_i32, %c0_i32_0 : i32, i32
  }
  func.func @transform_2(%arg0: i32, %arg1: i32) -> (i32, i32) {
    %c0_i32 = arith.constant 0 : i32
    %c0_i32_0 = arith.constant 0 : i32
    %c0_i32_1 = arith.constant 0 : i32
    return %c0_i32, %c0_i32_0 : i32, i32
  }
  func.func @transform_3(%arg0: i32, %arg1: i32) -> (i32, i32) {
    %c0_i32 = arith.constant 0 : i32
    %c0_i32_0 = arith.constant 0 : i32
    %c0_i32_1 = arith.constant 0 : i32
    return %c0_i32, %c0_i32_0 : i32, i32
  }
  func.func @transform_4(%arg0: i32, %arg1: i32) -> (i32, i32) {
    %c0_i32 = arith.constant 0 : i32
    %c0_i32_0 = arith.constant 0 : i32
    %c0_i32_1 = arith.constant 0 : i32
    return %c0_i32, %c0_i32_0 : i32, i32
  }
  func.func @transform_5(%arg0: i32, %arg1: i32) -> (i32, i32) {
    %c0_i32 = arith.constant 0 : i32
    %c0_i32_0 = arith.constant 0 : i32
    %c0_i32_1 = arith.constant 0 : i32
    return %c0_i32, %c0_i32_0 : i32, i32
  }
  func.func @transform_6(%arg0: i32, %arg1: i32) -> (i32, i32) {
    %c0_i32 = arith.constant 0 : i32
    %c0_i32_0 = arith.constant 0 : i32
    %c0_i32_1 = arith.constant 0 : i32
    return %c0_i32, %c0_i32_0 : i32, i32
  }
  func.func @transform_7(%arg0: i32, %arg1: i32) -> (i32, i32, i32) {
    %c0_i32 = arith.constant 0 : i32
    %c0_i32_0 = arith.constant 0 : i32
    return %arg0, %arg1, %c0_i32 : i32, i32, i32
  }
}

module attributes {stable_mosaic.version = 11 : i64} {
  func.func @_mbconv_kernel(%arg0: i32, %arg1: i32, %arg2: memref<1x256x128xbf16, #tpu.memory_space<vmem>>, %arg3: memref<128x128xbf16, #tpu.memory_space<vmem>>, %arg4: memref<1x128xf32, #tpu.memory_space<vmem>>, %arg5: memref<9x128xbf16, #tpu.memory_space<vmem>>, %arg6: memref<1x128xf32, #tpu.memory_space<vmem>>, %arg7: memref<128x128xbf16, #tpu.memory_space<vmem>>, %arg8: memref<1x128xf32, #tpu.memory_space<vmem>>, %arg9: memref<1x32x128xbf16, #tpu.memory_space<vmem>>, %arg10: memref<36x9x128xf32, #tpu.memory_space<vmem>>) attributes {dimension_semantics = [#tpu.dimension_semantics<parallel>, #tpu.dimension_semantics<arbitrary>], iteration_bounds = array<i64: 2, 2>, scalar_prefetch = 0 : i64, scratch_operands = 1 : i64, tpu.core_type = #tpu.core_type<tc>, window_params = [{transform_indices = @transform_0, window_bounds = array<i64: 1, 256, 128>}, {pipeline_mode = #tpu.pipeline_mode<synchronous>, transform_indices = @transform_1, window_bounds = array<i64: 128, 128>}, {pipeline_mode = #tpu.pipeline_mode<synchronous>, transform_indices = @transform_2, window_bounds = array<i64: 1, 128>}, {pipeline_mode = #tpu.pipeline_mode<synchronous>, transform_indices = @transform_3, window_bounds = array<i64: 9, 128>}, {pipeline_mode = #tpu.pipeline_mode<synchronous>, transform_indices = @transform_4, window_bounds = array<i64: 1, 128>}, {pipeline_mode = #tpu.pipeline_mode<synchronous>, transform_indices = @transform_5, window_bounds = array<i64: 128, 128>}, {pipeline_mode = #tpu.pipeline_mode<synchronous>, transform_indices = @transform_6, window_bounds = array<i64: 1, 128>}, {transform_indices = @transform_7, window_bounds = array<i64: 1, 32, 128>}]} {
    %c0_i32 = arith.constant 0 : i32
    %0 = arith.cmpi eq, %arg1, %c0_i32 : i32
    %1 = arith.extui %0 : i1 to i32
    %c0_i32_0 = arith.constant 0 : i32
    %2 = arith.cmpi ne, %1, %c0_i32_0 : i32
    scf.if %2 {
      %cst_45 = arith.constant 0.000000e+00 : f32
      %117 = vector.broadcast %cst_45 : f32 to vector<1x9x128xf32>
      %c35 = arith.constant 35 : index
      %c0_46 = arith.constant 0 : index
      %c0_47 = arith.constant 0 : index
      %118 = vector.load %arg10[%c35, %c0_46, %c0_47] : memref<36x9x128xf32, #tpu.memory_space<vmem>>, vector<1x9x128xf32>
      tpu.vector_store %arg10[%c35, %c0_46, %c0_47], %117 {strides = array<i32>} : memref<36x9x128xf32, #tpu.memory_space<vmem>>, vector<1x9x128xf32>,
      %cst_48 = arith.constant 0.000000e+00 : f32
      %119 = vector.broadcast %cst_48 : f32 to vector<9x1x128xf32>
      %c27 = arith.constant 27 : index
      %c8 = arith.constant 8 : index
      %c0_49 = arith.constant 0 : index
      %120 = vector.load %arg10[%c27, %c8, %c0_49] : memref<36x9x128xf32, #tpu.memory_space<vmem>>, vector<9x1x128xf32>
      tpu.vector_store %arg10[%c27, %c8, %c0_49], %119 {strides = array<i32>} : memref<36x9x128xf32, #tpu.memory_space<vmem>>, vector<9x1x128xf32>,
      %cst_50 = arith.constant 0.000000e+00 : f32
      %121 = vector.broadcast %cst_50 : f32 to vector<1x9x128xf32>
      %c26 = arith.constant 26 : index
      %c0_51 = arith.constant 0 : index
      %c0_52 = arith.constant 0 : index
      %122 = vector.load %arg10[%c26, %c0_51, %c0_52] : memref<36x9x128xf32, #tpu.memory_space<vmem>>, vector<1x9x128xf32>
      tpu.vector_store %arg10[%c26, %c0_51, %c0_52], %121 {strides = array<i32>} : memref<36x9x128xf32, #tpu.memory_space<vmem>>, vector<1x9x128xf32>,
      %cst_53 = arith.constant 0.000000e+00 : f32
      %123 = vector.broadcast %cst_53 : f32 to vector<9x1x128xf32>
      %c18 = arith.constant 18 : index
      %c0_54 = arith.constant 0 : index
      %c0_55 = arith.constant 0 : index
      %124 = vector.load %arg10[%c18, %c0_54, %c0_55] : memref<36x9x128xf32, #tpu.memory_space<vmem>>, vector<9x1x128xf32>
      tpu.vector_store %arg10[%c18, %c0_54, %c0_55], %123 {strides = array<i32>} : memref<36x9x128xf32, #tpu.memory_space<vmem>>, vector<9x1x128xf32>,
      %cst_56 = arith.constant 0.000000e+00 : f32
      %125 = vector.broadcast %cst_56 : f32 to vector<1x9x128xf32>
      %c9 = arith.constant 9 : index
      %c0_57 = arith.constant 0 : index
      %c0_58 = arith.constant 0 : index
      %126 = vector.load %arg10[%c9, %c0_57, %c0_58] : memref<36x9x128xf32, #tpu.memory_space<vmem>>, vector<1x9x128xf32>
      tpu.vector_store %arg10[%c9, %c0_57, %c0_58], %125 {strides = array<i32>} : memref<36x9x128xf32, #tpu.memory_space<vmem>>, vector<1x9x128xf32>,
      %cst_59 = arith.constant 0.000000e+00 : f32
      %127 = vector.broadcast %cst_59 : f32 to vector<9x1x128xf32>
      %c9_60 = arith.constant 9 : index
      %c8_61 = arith.constant 8 : index
      %c0_62 = arith.constant 0 : index
      %128 = vector.load %arg10[%c9_60, %c8_61, %c0_62] : memref<36x9x128xf32, #tpu.memory_space<vmem>>, vector<9x1x128xf32>
      tpu.vector_store %arg10[%c9_60, %c8_61, %c0_62], %127 {strides = array<i32>} : memref<36x9x128xf32, #tpu.memory_space<vmem>>, vector<9x1x128xf32>,
      %cst_63 = arith.constant 0.000000e+00 : f32
      %129 = vector.broadcast %cst_63 : f32 to vector<1x9x128xf32>
      %c0_64 = arith.constant 0 : index
      %c0_65 = arith.constant 0 : index
      %c0_66 = arith.constant 0 : index
      %130 = vector.load %arg10[%c0_64, %c0_65, %c0_66] : memref<36x9x128xf32, #tpu.memory_space<vmem>>, vector<1x9x128xf32>
      tpu.vector_store %arg10[%c0_64, %c0_65, %c0_66], %129 {strides = array<i32>} : memref<36x9x128xf32, #tpu.memory_space<vmem>>, vector<1x9x128xf32>,
      %cst_67 = arith.constant 0.000000e+00 : f32
      %131 = vector.broadcast %cst_67 : f32 to vector<9x1x128xf32>
      %c0_68 = arith.constant 0 : index
      %c0_69 = arith.constant 0 : index
      %c0_70 = arith.constant 0 : index
      %132 = vector.load %arg10[%c0_68, %c0_69, %c0_70] : memref<36x9x128xf32, #tpu.memory_space<vmem>>, vector<9x1x128xf32>
      tpu.vector_store %arg10[%c0_68, %c0_69, %c0_70], %131 {strides = array<i32>} : memref<36x9x128xf32, #tpu.memory_space<vmem>>, vector<9x1x128xf32>,
      %c0_71 = arith.constant 0 : index
      %c0_72 = arith.constant 0 : index
      %c0_73 = arith.constant 0 : index
      %133 = vector.load %arg2[%c0_71, %c0_72, %c0_73] : memref<1x256x128xbf16, #tpu.memory_space<vmem>>, vector<1x256x128xbf16>
      %134 = vector.shape_cast %133 : vector<1x256x128xbf16> to vector<256x128xbf16>
      %c0_74 = arith.constant 0 : index
      %c0_75 = arith.constant 0 : index
      %135 = vector.load %arg3[%c0_74, %c0_75] : memref<128x128xbf16, #tpu.memory_space<vmem>>, vector<128x128xbf16>
      %cst_76 = arith.constant dense<0.000000e+00> : vector<256x128xf32>
      %136 = tpu.matmul %134, %135, %cst_76 {dimension_numbers = #tpu.dot_dimension_numbers<[1], [0], [0], [1], [0, 0, 1, 1], [], []>} : vector<256x128xbf16>, vector<128x128xbf16>, vector<256x128xf32> -> vector<256x128xf32>
      %c0_77 = arith.constant 0 : index
      %c0_78 = arith.constant 0 : index
      %137 = vector.load %arg4[%c0_77, %c0_78] : memref<1x128xf32, #tpu.memory_space<vmem>>, vector<1x128xf32>
      %138 = vector.broadcast %137 : vector<1x128xf32> to vector<256x128xf32>
      %139 = arith.addf %136, %138 : vector<256x128xf32>
      %cst_79 = arith.constant 0.000000e+00 : f32
      %cst_80 = arith.constant 6.000000e+00 : f32
      %140 = vector.broadcast %cst_79 : f32 to vector<256x128xf32>
      %141 = arith.maximumf %140, %139 : vector<256x128xf32>
      %142 = vector.broadcast %cst_80 : f32 to vector<256x128xf32>
      %143 = arith.minimumf %142, %141 : vector<256x128xf32>
      %144 = vector.extract_strided_slice %143 {offsets = [0, 0], sizes = [64, 128], strides = [1, 1]} : vector<256x128xf32> to vector<64x128xf32>
      %145 = vector.shape_cast %144 : vector<64x128xf32> to vector<8x8x128xf32>
      %c27_81 = arith.constant 27 : index
      %c0_82 = arith.constant 0 : index
      %c0_83 = arith.constant 0 : index
      %146 = vector.load %arg10[%c27_81, %c0_82, %c0_83] : memref<36x9x128xf32, #tpu.memory_space<vmem>>, vector<8x8x128xf32>
      tpu.vector_store %arg10[%c27_81, %c0_82, %c0_83], %145 {strides = array<i32>} : memref<36x9x128xf32, #tpu.memory_space<vmem>>, vector<8x8x128xf32>,
      %147 = vector.extract_strided_slice %143 {offsets = [64, 0], sizes = [64, 128], strides = [1, 1]} : vector<256x128xf32> to vector<64x128xf32>
      %148 = vector.shape_cast %147 : vector<64x128xf32> to vector<8x8x128xf32>
      %c18_84 = arith.constant 18 : index
      %c1_85 = arith.constant 1 : index
      %c0_86 = arith.constant 0 : index
      %149 = vector.load %arg10[%c18_84, %c1_85, %c0_86] : memref<36x9x128xf32, #tpu.memory_space<vmem>>, vector<8x8x128xf32>
      tpu.vector_store %arg10[%c18_84, %c1_85, %c0_86], %148 {strides = array<i32>} : memref<36x9x128xf32, #tpu.memory_space<vmem>>, vector<8x8x128xf32>,
      %150 = vector.extract_strided_slice %143 {offsets = [128, 0], sizes = [64, 128], strides = [1, 1]} : vector<256x128xf32> to vector<64x128xf32>
      %151 = vector.shape_cast %150 : vector<64x128xf32> to vector<8x8x128xf32>
      %c10 = arith.constant 10 : index
      %c0_87 = arith.constant 0 : index
      %c0_88 = arith.constant 0 : index
      %152 = vector.load %arg10[%c10, %c0_87, %c0_88] : memref<36x9x128xf32, #tpu.memory_space<vmem>>, vector<8x8x128xf32>
      tpu.vector_store %arg10[%c10, %c0_87, %c0_88], %151 {strides = array<i32>} : memref<36x9x128xf32, #tpu.memory_space<vmem>>, vector<8x8x128xf32>,
      %153 = vector.extract_strided_slice %143 {offsets = [192, 0], sizes = [64, 128], strides = [1, 1]} : vector<256x128xf32> to vector<64x128xf32>
      %154 = vector.shape_cast %153 : vector<64x128xf32> to vector<8x8x128xf32>
      %c1_89 = arith.constant 1 : index
      %c1_90 = arith.constant 1 : index
      %c0_91 = arith.constant 0 : index
      %155 = vector.load %arg10[%c1_89, %c1_90, %c0_91] : memref<36x9x128xf32, #tpu.memory_space<vmem>>, vector<8x8x128xf32>
      tpu.vector_store %arg10[%c1_89, %c1_90, %c0_91], %154 {strides = array<i32>} : memref<36x9x128xf32, #tpu.memory_space<vmem>>, vector<8x8x128xf32>,
    } else {
    }
    %c4_i32 = arith.constant 4 : i32
    %3 = arith.muli %arg1, %c4_i32 : i32
    %4 = tpu.assume_multiple %3, 4 : i32
    %c0 = arith.constant 0 : index
    %c0_1 = arith.constant 0 : index
    %5 = vector.load %arg5[%c0, %c0_1] : memref<9x128xbf16, #tpu.memory_space<vmem>>, vector<9x128xbf16>
    %6 = arith.extf %5 : vector<9x128xbf16> to vector<9x128xf32>
    %cst = arith.constant 0.000000e+00 : f32
    %7 = vector.broadcast %cst : f32 to vector<4x8x128xf32>
    %c0_i32_2 = arith.constant 0 : i32
    %8 = arith.addi %c0_i32_2, %4 : i32
    %c0_i32_3 = arith.constant 0 : i32
    %9 = arith.addi %8, %c0_i32_3 : i32
    %10 = arith.index_cast %9 : i32 to index
    %c0_4 = arith.constant 0 : index
    %c0_5 = arith.constant 0 : index
    %11 = vector.load %arg10[%10, %c0_4, %c0_5] : memref<36x9x128xf32, #tpu.memory_space<vmem>>, vector<4x8x128xf32>
    %12 = vector.extract_strided_slice %6 {offsets = [0, 0], sizes = [1, 128], strides = [1, 1]} : vector<9x128xf32> to vector<1x128xf32>
    %13 = vector.shape_cast %12 : vector<1x128xf32> to vector<128xf32>
    %14 = vector.shape_cast %13 : vector<128xf32> to vector<1x1x128xf32>
    %15 = vector.broadcast %14 : vector<1x1x128xf32> to vector<4x8x128xf32>
    %16 = arith.mulf %11, %15 : vector<4x8x128xf32>
    %17 = arith.addf %7, %16 : vector<4x8x128xf32>
    %c9_i32 = arith.constant 9 : i32
    %18 = arith.addi %c9_i32, %4 : i32
    %c0_i32_6 = arith.constant 0 : i32
    %19 = arith.addi %18, %c0_i32_6 : i32
    %20 = arith.index_cast %19 : i32 to index
    %c0_7 = arith.constant 0 : index
    %c0_8 = arith.constant 0 : index
    %21 = vector.load %arg10[%20, %c0_7, %c0_8] : memref<36x9x128xf32, #tpu.memory_space<vmem>>, vector<4x8x128xf32>
    %22 = vector.extract_strided_slice %6 {offsets = [1, 0], sizes = [1, 128], strides = [1, 1]} : vector<9x128xf32> to vector<1x128xf32>
    %23 = vector.shape_cast %22 : vector<1x128xf32> to vector<128xf32>
    %24 = vector.shape_cast %23 : vector<128xf32> to vector<1x1x128xf32>
    %25 = vector.broadcast %24 : vector<1x1x128xf32> to vector<4x8x128xf32>
    %26 = arith.mulf %21, %25 : vector<4x8x128xf32>
    %27 = arith.addf %17, %26 : vector<4x8x128xf32>
    %c0_i32_9 = arith.constant 0 : i32
    %28 = arith.addi %c0_i32_9, %4 : i32
    %c0_i32_10 = arith.constant 0 : i32
    %29 = arith.addi %28, %c0_i32_10 : i32
    %30 = arith.index_cast %29 : i32 to index
    %c1 = arith.constant 1 : index
    %c0_11 = arith.constant 0 : index
    %31 = vector.load %arg10[%30, %c1, %c0_11] : memref<36x9x128xf32, #tpu.memory_space<vmem>>, vector<4x8x128xf32>
    %32 = vector.extract_strided_slice %6 {offsets = [2, 0], sizes = [1, 128], strides = [1, 1]} : vector<9x128xf32> to vector<1x128xf32>
    %33 = vector.shape_cast %32 : vector<1x128xf32> to vector<128xf32>
    %34 = vector.shape_cast %33 : vector<128xf32> to vector<1x1x128xf32>
    %35 = vector.broadcast %34 : vector<1x1x128xf32> to vector<4x8x128xf32>
    %36 = arith.mulf %31, %35 : vector<4x8x128xf32>
    %37 = arith.addf %27, %36 : vector<4x8x128xf32>
    %c18_i32 = arith.constant 18 : i32
    %38 = arith.addi %c18_i32, %4 : i32
    %c0_i32_12 = arith.constant 0 : i32
    %39 = arith.addi %38, %c0_i32_12 : i32
    %40 = arith.index_cast %39 : i32 to index
    %c0_13 = arith.constant 0 : index
    %c0_14 = arith.constant 0 : index
    %41 = vector.load %arg10[%40, %c0_13, %c0_14] : memref<36x9x128xf32, #tpu.memory_space<vmem>>, vector<4x8x128xf32>
    %42 = vector.extract_strided_slice %6 {offsets = [3, 0], sizes = [1, 128], strides = [1, 1]} : vector<9x128xf32> to vector<1x128xf32>
    %43 = vector.shape_cast %42 : vector<1x128xf32> to vector<128xf32>
    %44 = vector.shape_cast %43 : vector<128xf32> to vector<1x1x128xf32>
    %45 = vector.broadcast %44 : vector<1x1x128xf32> to vector<4x8x128xf32>
    %46 = arith.mulf %41, %45 : vector<4x8x128xf32>
    %47 = arith.addf %37, %46 : vector<4x8x128xf32>
    %c27_i32 = arith.constant 27 : i32
    %48 = arith.addi %c27_i32, %4 : i32
    %c0_i32_15 = arith.constant 0 : i32
    %49 = arith.addi %48, %c0_i32_15 : i32
    %50 = arith.index_cast %49 : i32 to index
    %c0_16 = arith.constant 0 : index
    %c0_17 = arith.constant 0 : index
    %51 = vector.load %arg10[%50, %c0_16, %c0_17] : memref<36x9x128xf32, #tpu.memory_space<vmem>>, vector<4x8x128xf32>
    %52 = vector.extract_strided_slice %6 {offsets = [4, 0], sizes = [1, 128], strides = [1, 1]} : vector<9x128xf32> to vector<1x128xf32>
    %53 = vector.shape_cast %52 : vector<1x128xf32> to vector<128xf32>
    %54 = vector.shape_cast %53 : vector<128xf32> to vector<1x1x128xf32>
    %55 = vector.broadcast %54 : vector<1x1x128xf32> to vector<4x8x128xf32>
    %56 = arith.mulf %51, %55 : vector<4x8x128xf32>
    %57 = arith.addf %47, %56 : vector<4x8x128xf32>
    %c18_i32_18 = arith.constant 18 : i32
    %58 = arith.addi %c18_i32_18, %4 : i32
    %c0_i32_19 = arith.constant 0 : i32
    %59 = arith.addi %58, %c0_i32_19 : i32
    %60 = arith.index_cast %59 : i32 to index
    %c1_20 = arith.constant 1 : index
    %c0_21 = arith.constant 0 : index
    %61 = vector.load %arg10[%60, %c1_20, %c0_21] : memref<36x9x128xf32, #tpu.memory_space<vmem>>, vector<4x8x128xf32>
    %62 = vector.extract_strided_slice %6 {offsets = [5, 0], sizes = [1, 128], strides = [1, 1]} : vector<9x128xf32> to vector<1x128xf32>
    %63 = vector.shape_cast %62 : vector<1x128xf32> to vector<128xf32>
    %64 = vector.shape_cast %63 : vector<128xf32> to vector<1x1x128xf32>
    %65 = vector.broadcast %64 : vector<1x1x128xf32> to vector<4x8x128xf32>
    %66 = arith.mulf %61, %65 : vector<4x8x128xf32>
    %67 = arith.addf %57, %66 : vector<4x8x128xf32>
    %c0_i32_22 = arith.constant 0 : i32
    %68 = arith.addi %c0_i32_22, %4 : i32
    %c1_i32 = arith.constant 1 : i32
    %69 = arith.addi %68, %c1_i32 : i32
    %70 = arith.index_cast %69 : i32 to index
    %c0_23 = arith.constant 0 : index
    %c0_24 = arith.constant 0 : index
    %71 = vector.load %arg10[%70, %c0_23, %c0_24] : memref<36x9x128xf32, #tpu.memory_space<vmem>>, vector<4x8x128xf32>
    %72 = vector.extract_strided_slice %6 {offsets = [6, 0], sizes = [1, 128], strides = [1, 1]} : vector<9x128xf32> to vector<1x128xf32>
    %73 = vector.shape_cast %72 : vector<1x128xf32> to vector<128xf32>
    %74 = vector.shape_cast %73 : vector<128xf32> to vector<1x1x128xf32>
    %75 = vector.broadcast %74 : vector<1x1x128xf32> to vector<4x8x128xf32>
    %76 = arith.mulf %71, %75 : vector<4x8x128xf32>
    %77 = arith.addf %67, %76 : vector<4x8x128xf32>
    %c9_i32_25 = arith.constant 9 : i32
    %78 = arith.addi %c9_i32_25, %4 : i32
    %c1_i32_26 = arith.constant 1 : i32
    %79 = arith.addi %78, %c1_i32_26 : i32
    %80 = arith.index_cast %79 : i32 to index
    %c0_27 = arith.constant 0 : index
    %c0_28 = arith.constant 0 : index
    %81 = vector.load %arg10[%80, %c0_27, %c0_28] : memref<36x9x128xf32, #tpu.memory_space<vmem>>, vector<4x8x128xf32>
    %82 = vector.extract_strided_slice %6 {offsets = [7, 0], sizes = [1, 128], strides = [1, 1]} : vector<9x128xf32> to vector<1x128xf32>
    %83 = vector.shape_cast %82 : vector<1x128xf32> to vector<128xf32>
    %84 = vector.shape_cast %83 : vector<128xf32> to vector<1x1x128xf32>
    %85 = vector.broadcast %84 : vector<1x1x128xf32> to vector<4x8x128xf32>
    %86 = arith.mulf %81, %85 : vector<4x8x128xf32>
    %87 = arith.addf %77, %86 : vector<4x8x128xf32>
    %c0_i32_29 = arith.constant 0 : i32
    %88 = arith.addi %c0_i32_29, %4 : i32
    %c1_i32_30 = arith.constant 1 : i32
    %89 = arith.addi %88, %c1_i32_30 : i32
    %90 = arith.index_cast %89 : i32 to index
    %c1_31 = arith.constant 1 : index
    %c0_32 = arith.constant 0 : index
    %91 = vector.load %arg10[%90, %c1_31, %c0_32] : memref<36x9x128xf32, #tpu.memory_space<vmem>>, vector<4x8x128xf32>
    %92 = vector.extract_strided_slice %6 {offsets = [8, 0], sizes = [1, 128], strides = [1, 1]} : vector<9x128xf32> to vector<1x128xf32>
    %93 = vector.shape_cast %92 : vector<1x128xf32> to vector<128xf32>
    %94 = vector.shape_cast %93 : vector<128xf32> to vector<1x1x128xf32>
    %95 = vector.broadcast %94 : vector<1x1x128xf32> to vector<4x8x128xf32>
    %96 = arith.mulf %91, %95 : vector<4x8x128xf32>
    %97 = arith.addf %87, %96 : vector<4x8x128xf32>
    %c0_33 = arith.constant 0 : index
    %c0_34 = arith.constant 0 : index
    %98 = vector.load %arg6[%c0_33, %c0_34] : memref<1x128xf32, #tpu.memory_space<vmem>>, vector<1x128xf32>
    %99 = vector.shape_cast %98 : vector<1x128xf32> to vector<1x1x128xf32>
    %100 = vector.broadcast %99 : vector<1x1x128xf32> to vector<4x8x128xf32>
    %101 = arith.addf %97, %100 : vector<4x8x128xf32>
    %cst_35 = arith.constant 0.000000e+00 : f32
    %cst_36 = arith.constant 6.000000e+00 : f32
    %102 = vector.broadcast %cst_35 : f32 to vector<4x8x128xf32>
    %103 = arith.maximumf %102, %101 : vector<4x8x128xf32>
    %104 = vector.broadcast %cst_36 : f32 to vector<4x8x128xf32>
    %105 = arith.minimumf %104, %103 : vector<4x8x128xf32>
    %106 = vector.shape_cast %105 : vector<4x8x128xf32> to vector<32x128xf32>
    %107 = arith.truncf %106 : vector<32x128xf32> to vector<32x128xbf16>
    %c0_37 = arith.constant 0 : index
    %c0_38 = arith.constant 0 : index
    %108 = vector.load %arg7[%c0_37, %c0_38] : memref<128x128xbf16, #tpu.memory_space<vmem>>, vector<128x128xbf16>
    %cst_39 = arith.constant dense<0.000000e+00> : vector<32x128xf32>
    %109 = tpu.matmul %107, %108, %cst_39 {dimension_numbers = #tpu.dot_dimension_numbers<[1], [0], [0], [1], [0, 0, 1, 1], [], []>} : vector<32x128xbf16>, vector<128x128xbf16>, vector<32x128xf32> -> vector<32x128xf32>
    %c0_40 = arith.constant 0 : index
    %c0_41 = arith.constant 0 : index
    %110 = vector.load %arg8[%c0_40, %c0_41] : memref<1x128xf32, #tpu.memory_space<vmem>>, vector<1x128xf32>
    %111 = vector.broadcast %110 : vector<1x128xf32> to vector<32x128xf32>
    %112 = arith.addf %109, %111 : vector<32x128xf32>
    %113 = arith.truncf %112 : vector<32x128xf32> to vector<32x128xbf16>
    %c0_42 = arith.constant 0 : index
    %c0_43 = arith.constant 0 : index
    %c0_44 = arith.constant 0 : index
    %114 = vector.load %arg9[%c0_42, %c0_43, %c0_44] : memref<1x32x128xbf16, #tpu.memory_space<vmem>>, vector<1x32x128xbf16>
    %115 = vector.shape_cast %114 : vector<1x32x128xbf16> to vector<32x128xbf16>
    %116 = vector.shape_cast %113 : vector<32x128xbf16> to vector<1x32x128xbf16>
    tpu.vector_store %arg9[%c0_42, %c0_43, %c0_44], %116 {strides = array<i32>} : memref<1x32x128xbf16, #tpu.memory_space<vmem>>, vector<1x32x128xbf16>,
    return
  }
  func.func @transform_0(%arg0: i32, %arg1: i32) -> (i32, i32, i32) {
    %c0_i32 = arith.constant 0 : i32
    %c0_i32_0 = arith.constant 0 : i32
    %c0_i32_1 = arith.constant 0 : i32
    return %arg0, %c0_i32, %c0_i32_0 : i32, i32, i32
  }
  func.func @transform_1(%arg0: i32, %arg1: i32) -> (i32, i32) {
    %c0_i32 = arith.constant 0 : i32
    %c0_i32_0 = arith.constant 0 : i32
    %c0_i32_1 = arith.constant 0 : i32
    return %c0_i32, %c0_i32_0 : i32, i32
  }
  func.func @transform_2(%arg0: i32, %arg1: i32) -> (i32, i32) {
    %c0_i32 = arith.constant 0 : i32
    %c0_i32_0 = arith.constant 0 : i32
    %c0_i32_1 = arith.constant 0 : i32
    return %c0_i32, %c0_i32_0 : i32, i32
  }
  func.func @transform_3(%arg0: i32, %arg1: i32) -> (i32, i32) {
    %c0_i32 = arith.constant 0 : i32
    %c0_i32_0 = arith.constant 0 : i32
    %c0_i32_1 = arith.constant 0 : i32
    return %c0_i32, %c0_i32_0 : i32, i32
  }
  func.func @transform_4(%arg0: i32, %arg1: i32) -> (i32, i32) {
    %c0_i32 = arith.constant 0 : i32
    %c0_i32_0 = arith.constant 0 : i32
    %c0_i32_1 = arith.constant 0 : i32
    return %c0_i32, %c0_i32_0 : i32, i32
  }
  func.func @transform_5(%arg0: i32, %arg1: i32) -> (i32, i32) {
    %c0_i32 = arith.constant 0 : i32
    %c0_i32_0 = arith.constant 0 : i32
    %c0_i32_1 = arith.constant 0 : i32
    return %c0_i32, %c0_i32_0 : i32, i32
  }
  func.func @transform_6(%arg0: i32, %arg1: i32) -> (i32, i32) {
    %c0_i32 = arith.constant 0 : i32
    %c0_i32_0 = arith.constant 0 : i32
    %c0_i32_1 = arith.constant 0 : i32
    return %c0_i32, %c0_i32_0 : i32, i32
  }
  func.func @transform_7(%arg0: i32, %arg1: i32) -> (i32, i32, i32) {
    %c0_i32 = arith.constant 0 : i32
    %c0_i32_0 = arith.constant 0 : i32
    return %arg0, %arg1, %c0_i32 : i32, i32, i32
  }
}

</mosaic_0001>

<bundles_post_ra>
// kernel: _stage_forward.2
= control target key start
LH: loop header
LB: loop body
LE: loop exit
PB: predicated region body
PF: predicated region fallthrough
CT: control target
= control target key end

     0   :  { %s1633_s24 = smov 0   ;;  %s1635_s25 = smov 0   ;;  %s1896_s0 = inlined_call_operand.vmem [shape: bf16[2,256,128], index: 0, kind: input, shape index: {}]   ;;  %s1897_s1 = inlined_call_operand.vmem [shape: bf16[128,128], index: 1, kind: input, shape index: {}]   ;;  %s1898_s2 = inlined_call_operand.vmem [shape: f32[1,128], index: 2, kind: input, shape index: {}]   ;;  %s1899_s3 = inlined_call_operand.vmem [shape: bf16[9,128], index: 3, kind: input, shape index: {}]   ;;  %s1900_s4 = inlined_call_operand.vmem [shape: f32[1,128], index: 4, kind: input, shape index: {}]   ;;  %s1901_s5 = inlined_call_operand.vmem [shape: bf16[128,128], index: 5, kind: input, shape index: {}]   ;;  %s1902_s6 = inlined_call_operand.vmem [shape: f32[1,128], index: 6, kind: input, shape index: {}]   ;;  %s1903_s7 = inlined_call_operand.vmem [shape: bf16[2,64,128], index: 7, kind: output, shape index: {}]  }
   0x1   :  { %s1637_s26 = smov 0   ;;  %s1639_s27 = smov 0  }
   0x2   :  { %s1641_s28 = smov 0  }
   0x3 LB: > { %s26_s29 = sadd.s32 1, %s1582_s26  ;;  %s29_s30 = sadd.s32 1, %s1586_s27  ;;  %s1590_s28 = sphi %s1641_s28, %s17_s28   ;;  %s1586_s27 = sphi %s1639_s27, %s1907_s27   ;;  %s1582_s26 = sphi %s1637_s26, %s1906_s26   ;;  %s1578_s25 = sphi %s1635_s25, %s1905_s25   ;;  %s1574_s24 = sphi %s1633_s24, %s1904_s24  }
   0x4   : > { %p27_p0 = scmp.ge.s32.totalorder %s26_s29, 2  ;;  %p1251_p1 = scmp.ge.s32.totalorder %s1590_s28, 1 }
   0x5   : > { %p251_p2 = scmp.lt.s32.totalorder %s1590_s28, 5 }
   0x6   : > { %s1909_s29 = smov (%p27_p0, %s26_s29), 0  ;;  %s1911_s30 = smov (!%p27_p0, %s29_s30), %s1586_s27 }
   0x7   : > { %p252_p3 = pnand %p1251_p1, %p251_p2  ;;  %p31_p4 = scmp.ge.s32.totalorder %s1911_s30, 2 }
   0x8   : > { %p287_p5 = scmp.lt.s32.totalorder (!%p252_p3), %s1578_s25, 1  ;;  %s1254_s8 = sshll.u32 (!%p252_p3), %s1574_s24, 2 }
   0x9   : > { %s1913_s30 = smov (%p31_p4, %s1911_s30), 0  ;;  %255 = sbr.rel (%p252_p3) target bundleno = 557 (0x22d), region = 48 }
   0xa   : > { %p295_p6 = scmp.lt.s32.totalorder (!%p252_p3), %s1254_s8, 7  ;;  %p1257_p7 = scmp.ne.s32.totalorder (!%p252_p3), %s1574_s24, 0 }
  0x10   : > { %s1915_s25 = smov (!%p287_p5, %s1578_s25), 1  ;;  %s1917_s8 = smov (!%p295_p6, %s1254_s8), 7 }
  0x11   : > { %s1339_s9 = sshll.u32 %s1915_s25, 7  ;;  %s1255_s10 = sshll.u32 %s1915_s25, 3  ;;  %v1520_v0 = vld [vmem:[%s1897_s1] sm:$0xff] (!%p1257_p7)   ;;  %v1592_v1 = vmov (!%p1257_p7), 0.0   ;;  %v1521_v2 = vld [vmem:[%s1897_s1 + $0x8] sm:$0xff] (!%p1257_p7)   ;;  %v1522_v3 = vld [vmem:[%s1897_s1 + $0x10] sm:$0xff] (!%p1257_p7)  }
  0x12   : > { %s1669_s13 = scalar_lea.vmem %s1896_s0, %s1339_s9  ;;  %s298_s14 = sadd.s32 %s1255_s10, %s1917_s8  ;;  %308 = vst [vmem:[#allocation2 + $0x230] sm:$0xff] (!%p1257_p7), %v1592_v1  ;;  %309 = vst [vmem:[#allocation2 + $0x238] sm:$0x1] (!%p1257_p7), %v1592_v1  ;;  %1395 = vmatprep.subr.bf16.mxu0 (!%p1257_p7), %v1520_v0  ;;  %1463 = vmatprep.subr.bf16.mxu1 (!%p1257_p7), %v1520_v0  ;;  %v1523_v4 = vld [vmem:[%s1897_s1 + $0x18] sm:$0xff] (!%p1257_p7)   ;;  %v1524_v7 = vld [vmem:[%s1897_s1 + $0x20] sm:$0xff] (!%p1257_p7)  }
  0x13   : > { %s1256_s15 = sshll.u32 %s298_s14, 2  ;;  %306 = sbr.rel (%p1257_p7) target bundleno = 296 (0x128), region = 52  ;;  %311 = vst [vmem:[#allocation2 + $0x1b8] sm:$0x1] (!%p1257_p7), %v1592_v1  ;;  %312 = vst [vmem:[#allocation2 + $0x1c8] sm:$0x1] (!%p1257_p7), %v1592_v1  ;;  %1396 = vmatpush3.bf16.msra.mxu0 (!%p1257_p7), %v1520_v0  ;;  %1471 = vmatpush3.bf16.msra.mxu1 (!%p1257_p7), %v1520_v0 }
  0x14   : > { %s1674_s18 = scalar_lea.vmem %s1903_s7, %s1256_s15  ;;  %313 = vst [vmem:[#allocation2 + $0x1d8] sm:$0x1] (!%p1257_p7), %v1592_v1  ;;  %314 = vst [vmem:[#allocation2 + $0x1e8] sm:$0x1] (!%p1257_p7), %v1592_v1  ;;  %1397 = vmatprep.subr.bf16.mxu0 (!%p1257_p7), %v1521_v2  ;;  %1464 = vmatprep.subr.bf16.mxu1 (!%p1257_p7), %v1521_v2  ;;  %v1528_v5 = vld [vmem:[%s1669_s13] sm:$0xff] (!%p1257_p7)   ;;  %v1525_v8 = vld [vmem:[%s1897_s1 + $0x28] sm:$0xff] (!%p1257_p7)  }
  0x15   : > { %315 = vst [vmem:[#allocation2 + $0x1f8] sm:$0x1] (!%p1257_p7), %v1592_v1  ;;  %316 = vst [vmem:[#allocation2 + $0x208] sm:$0x1] (!%p1257_p7), %v1592_v1  ;;  %v1529_v6 = vld [vmem:[%s1669_s13 + $0x40] sm:$0xff] (!%p1257_p7)   ;;  %1411 = vmatprep.mubr.bf16.mxu0 (!%p1257_p7), %v1528_v5  ;;  %v1526_v9 = vld [vmem:[%s1897_s1 + $0x30] sm:$0xff] (!%p1257_p7)  }
  0x16   : > { %317 = vst [vmem:[#allocation2 + $0x218] sm:$0x1] (!%p1257_p7), %v1592_v1  ;;  %318 = vst [vmem:[#allocation2 + $0x228] sm:$0x1] (!%p1257_p7), %v1592_v1  ;;  %1427 = vmatprep.mubr.bf16.mxu1 (!%p1257_p7), %v1529_v6  ;;  %v1527_v10 = vld [vmem:[%s1897_s1 + $0x38] sm:$0xff] (!%p1257_p7)   ;;  %v1530_v11 = vld [vmem:[%s1669_s13 + $0x8] sm:$0xff] (!%p1257_p7)  }
  0x17   : > { %321 = vst [vmem:[#allocation2 + $0x1a0] sm:$0xff] (!%p1257_p7), %v1592_v1  ;;  %322 = vst [vmem:[#allocation2 + $0x1a8] sm:$0x1] (!%p1257_p7), %v1592_v1  ;;  %1398 = vmatpush3.bf16.msra.mxu0 (!%p1257_p7), %v1521_v2  ;;  %1472 = vmatpush3.bf16.msra.mxu1 (!%p1257_p7), %v1521_v2  ;;  %v1531_v12 = vld [vmem:[%s1669_s13 + $0x48] sm:$0xff] (!%p1257_p7)   ;;  %v1532_v13 = vld [vmem:[%s1669_s13 + $0x10] sm:$0xff] (!%p1257_p7)  }
  0x18   : > { %324 = vst [vmem:[#allocation2 + $0x120] sm:$0x1] (!%p1257_p7), %v1592_v1  ;;  %325 = vst [vmem:[#allocation2 + $0x130] sm:$0x1] (!%p1257_p7), %v1592_v1  ;;  %1399 = vmatprep.subr.bf16.mxu0 (!%p1257_p7), %v1522_v3  ;;  %1465 = vmatprep.subr.bf16.mxu1 (!%p1257_p7), %v1522_v3  ;;  %v1533_v14 = vld [vmem:[%s1669_s13 + $0x50] sm:$0xff] (!%p1257_p7)   ;;  %v1534_v15 = vld [vmem:[%s1669_s13 + $0x18] sm:$0xff] (!%p1257_p7)  }
  0x19   : > { %326 = vst [vmem:[#allocation2 + $0x140] sm:$0x1] (!%p1257_p7), %v1592_v1  ;;  %327 = vst [vmem:[#allocation2 + $0x150] sm:$0x1] (!%p1257_p7), %v1592_v1  ;;  %v1535_v16 = vld [vmem:[%s1669_s13 + $0x58] sm:$0xff] (!%p1257_p7)   ;;  %v1536_v17 = vld [vmem:[%s1669_s13 + $0x20] sm:$0xff] (!%p1257_p7)  }
  0x1a   : > { %328 = vst [vmem:[#allocation2 + $0x160] sm:$0x1] %v1592_v1  ;;  %329 = vst [vmem:[#allocation2 + $0x170] sm:$0x1] %v1592_v1  ;;  %v1537_v18 = vld [vmem:[%s1669_s13 + $0x60] sm:$0xff]   ;;  %v1538_v19 = vld [vmem:[%s1669_s13 + $0x28] sm:$0xff]  }
  0x1b   : > { %330 = vst [vmem:[#allocation2 + $0x180] sm:$0x1] %v1592_v1  ;;  %331 = vst [vmem:[#allocation2 + $0x190] sm:$0x1] %v1592_v1  ;;  %1400 = vmatpush3.bf16.msra.mxu0 %v1522_v3  ;;  %1473 = vmatpush3.bf16.msra.mxu1 %v1522_v3  ;;  %v1539_v20 = vld [vmem:[%s1669_s13 + $0x68] sm:$0xff]   ;;  %v1540_v21 = vld [vmem:[%s1669_s13 + $0x30] sm:$0xff]  }
  0x1c   : > { %334 = vst [vmem:[#allocation2 + $0x90] sm:$0xff] %v1592_v1  ;;  %335 = vst [vmem:[#allocation2 + $0x98] sm:$0x1] %v1592_v1  ;;  %1401 = vmatprep.subr.bf16.mxu0 %v1523_v4  ;;  %1466 = vmatprep.subr.bf16.mxu1 %v1523_v4  ;;  %v1541_v22 = vld [vmem:[%s1669_s13 + $0x70] sm:$0xff]   ;;  %v1542_v23 = vld [vmem:[%s1669_s13 + $0x38] sm:$0xff]  }
  0x1d   : > { %337 = vst [vmem:[#allocation2 + $0xa8] sm:$0x1] %v1592_v1  ;;  %338 = vst [vmem:[#allocation2 + $0xb8] sm:$0x1] %v1592_v1  ;;  %v1543_v24 = vld [vmem:[%s1669_s13 + $0x78] sm:$0xff]  }
  0x1e   : > { %339 = vst [vmem:[#allocation2 + $0xc8] sm:$0x1] %v1592_v1  ;;  %340 = vst [vmem:[#allocation2 + $0xd8] sm:$0x1] %v1592_v1  ;;  %v1720_v25 = vld [vmem:[%s1898_s2] ss:$0 sm:$0xff] }
  0x1f   : > { %341 = vst [vmem:[#allocation2 + $0xe8] sm:$0x1] %v1592_v1  ;;  %342 = vst [vmem:[#allocation2 + $0xf8] sm:$0x1] %v1592_v1  ;;  %1402 = vmatpush3.bf16.msra.mxu0 %v1523_v4  ;;  %1474 = vmatpush3.bf16.msra.mxu1 %v1523_v4 }
  0x20   : > { %343 = vst [vmem:[#allocation2 + $0x108] sm:$0x1] %v1592_v1  ;;  %344 = vst [vmem:[#allocation2 + $0x118] sm:$0x1] %v1592_v1  ;;  %1403 = vmatprep.subr.bf16.mxu0 %v1524_v7  ;;  %1467 = vmatprep.subr.bf16.mxu1 %v1524_v7 }
  0x21   : > { %345 = vst [vmem:[#allocation2] sm:$0xff] %v1592_v1  ;;  %346 = vst [vmem:[#allocation2 + $0x8] sm:$0x1] %v1592_v1 }
  0x22   : > { %348 = vst [vmem:[#allocation2 + $0x10] sm:$0x1] %v1592_v1  ;;  %349 = vst [vmem:[#allocation2 + $0x20] sm:$0x1] %v1592_v1 }
  0x23   : > { %350 = vst [vmem:[#allocation2 + $0x30] sm:$0x1] %v1592_v1  ;;  %351 = vst [vmem:[#allocation2 + $0x40] sm:$0x1] %v1592_v1  ;;  %1404 = vmatpush3.bf16.msra.mxu0 %v1524_v7  ;;  %1475 = vmatpush3.bf16.msra.mxu1 %v1524_v7 }
  0x24   : > { %352 = vst [vmem:[#allocation2 + $0x50] sm:$0x1] %v1592_v1  ;;  %353 = vst [vmem:[#allocation2 + $0x60] sm:$0x1] %v1592_v1  ;;  %1405 = vmatprep.subr.bf16.mxu0 %v1525_v8  ;;  %1468 = vmatprep.subr.bf16.mxu1 %v1525_v8 }
  0x25   : > { %354 = vst [vmem:[#allocation2 + $0x70] sm:$0x1] %v1592_v1  ;;  %355 = vst [vmem:[#allocation2 + $0x80] sm:$0x1] %v1592_v1 }
  0x26   : > { %319 = vst [vmem:[#allocation2 + $0x238] sm:$0x1] %v1592_v1  ;;  %332 = vst [vmem:[#allocation2 + $0x1a0] sm:$0x1] %v1592_v1 }
  0x27   : > { %336 = vst [vmem:[#allocation2 + $0x98] sm:$0x1] %v1592_v1  ;;  %347 = vst [vmem:[#allocation2] sm:$0x1] %v1592_v1  ;;  %1406 = vmatpush3.bf16.msra.mxu0 %v1525_v8  ;;  %1476 = vmatpush3.bf16.msra.mxu1 %v1525_v8 }
  0x28   : > { %1407 = vmatprep.subr.bf16.mxu0 %v1526_v9  ;;  %1469 = vmatprep.subr.bf16.mxu1 %v1526_v9 }
  0x2b   : > { %1408 = vmatpush3.bf16.msra.mxu0 %v1526_v9  ;;  %1477 = vmatpush3.bf16.msra.mxu1 %v1526_v9 }
  0x2c   : > { %1409 = vmatprep.subr.bf16.mxu0 %v1527_v10  ;;  %1470 = vmatprep.subr.bf16.mxu1 %v1527_v10 }
  0x2f   : > { %1410 = vmatpush3.bf16.msra.mxu0 %v1527_v10  ;;  %1478 = vmatpush3.bf16.msra.mxu1 %v1527_v10 }
  0x32   : > { %1412 = vmatmul.mubr.bf16.vlgmr.msra.gmra.mrb[0].mxu0 %v1530_v11  ;;  %1428 = vmatmul.mubr.bf16.vlgmr.msra.gmra.mrb[0].mxu1 %v1531_v12 }
  0x33   : > { %1415 = vmatprep.mubr.bf16.mxu0 %v1532_v13  ;;  %1431 = vmatprep.mubr.bf16.mxu1 %v1533_v14 }
  0x3a   : > { %1416 = vmatmul.mubr.bf16.gmra.mrb[4].mxu0 %v1534_v15  ;;  %1432 = vmatmul.mubr.bf16.gmra.mrb[4].mxu1 %v1535_v16 }
  0x3b   : > { %1419 = vmatprep.mubr.bf16.mxu0 %v1536_v17  ;;  %1435 = vmatprep.mubr.bf16.mxu1 %v1537_v18 }
  0x42   : > { %1420 = vmatmul.mubr.bf16.gmra.mrb[8].mxu0 %v1538_v19  ;;  %1436 = vmatmul.mubr.bf16.gmra.mrb[8].mxu1 %v1539_v20 }
  0x43   : > { %1423 = vmatprep.mubr.bf16.mxu0 %v1540_v21  ;;  %1439 = vmatprep.mubr.bf16.mxu1 %v1541_v22 }
  0x4a   : > { %1424 = vmatmul.mubr.bf16.gmra.mrb[12].mxu0 %v1542_v23  ;;  %1440 = vmatmul.mubr.bf16.gmra.mrb[12].mxu1 %v1543_v24 }
 0x105   : > { %v1413_v26 = vpop.f32.mrb[0].mxu0  ;;  %v1429_v27 = vpop.f32.mrb[0].mxu1 }
 0x106   : > { %v598_v28 = vadd.f32 %v1413_v26, %v1720_v25  ;;  %v662_v29 = vadd.f32 %v1429_v27, %v1720_v25  ;;  %v589_v30 = vpop.f32.mrb[1].mxu0  ;;  %v653_v31 = vpop.f32.mrb[1].mxu1 }
 0x107   : > { %v590_v32 = vadd.f32 %v1720_v25, %v589_v30  ;;  %v654_v33 = vadd.f32 %v1720_v25, %v653_v31  ;;  %v1414_v34 = vpop.f32.mrb[2].mxu0  ;;  %v1430_v35 = vpop.f32.mrb[2].mxu1 }
 0x108   : > { %v718_v36 = vmax.f32 %v598_v28, 0.0  ;;  %v734_v37 = vmax.f32 %v662_v29, 0.0  ;;  %v601_v38 = vadd.f32 %v1414_v34, %v1720_v25  ;;  %v665_v39 = vadd.f32 %v1430_v35, %v1720_v25  ;;  %v592_v40 = vpop.f32.mrb[3].mxu0  ;;  %v656_v41 = vpop.f32.mrb[3].mxu1 }
 0x109   : > { %v716_v42 = vmax.f32 %v590_v32, 0.0  ;;  %v732_v43 = vmax.f32 %v654_v33, 0.0  ;;  %v593_v44 = vadd.f32 %v1720_v25, %v592_v40  ;;  %v657_v45 = vadd.f32 %v1720_v25, %v656_v41 }
 0x10a   : > { %v750_v46 = vmin.f32 %v718_v36, 6.0  ;;  %v766_v47 = vmin.f32 %v734_v37, 6.0  ;;  %v719_v48 = vmax.f32 %v601_v38, 0.0  ;;  %v735_v49 = vmax.f32 %v665_v39, 0.0 }
 0x10b   : > { %v748_v50 = vmin.f32 %v716_v42, 6.0  ;;  %v764_v51 = vmin.f32 %v732_v43, 6.0  ;;  %v717_v52 = vmax.f32 %v593_v44, 0.0  ;;  %v733_v53 = vmax.f32 %v657_v45, 0.0 }
 0x10c   : > { %782 = vst [vmem:[#allocation2 + $0x1d0] sm:$0xff] %v750_v46  ;;  %799 = vst [vmem:[#allocation2 + $0xc0] sm:$0xff] %v766_v47  ;;  %v751_v54 = vmin.f32 %v719_v48, 6.0  ;;  %v767_v55 = vmin.f32 %v735_v49, 6.0 }
 0x10d   : > { %780 = vst [vmem:[#allocation2 + $0x1b0] sm:$0xff] %v748_v50  ;;  %797 = vst [vmem:[#allocation2 + $0xa0] sm:$0xff] %v764_v51  ;;  %v749_v56 = vmin.f32 %v717_v52, 6.0  ;;  %v765_v57 = vmin.f32 %v733_v53, 6.0  ;;  %v1417_v58 = vpop.f32.mrb[4].mxu0  ;;  %v1433_v59 = vpop.f32.mrb[4].mxu1 }
 0x10e   : > { %783 = vst [vmem:[#allocation2 + $0x1e0] sm:$0xff] %v751_v54  ;;  %800 = vst [vmem:[#allocation2 + $0xd0] sm:$0xff] %v767_v55  ;;  %v614_v60 = vadd.f32 %v1417_v58, %v1720_v25  ;;  %v678_v61 = vadd.f32 %v1433_v59, %v1720_v25  ;;  %v605_v62 = vpop.f32.mrb[5].mxu0  ;;  %v669_v63 = vpop.f32.mrb[5].mxu1 }
 0x10f   : > { %781 = vst [vmem:[#allocation2 + $0x1c0] sm:$0xff] %v749_v56  ;;  %798 = vst [vmem:[#allocation2 + $0xb0] sm:$0xff] %v765_v57  ;;  %v606_v0 = vadd.f32 %v1720_v25, %v605_v62  ;;  %v670_v1 = vadd.f32 %v1720_v25, %v669_v63  ;;  %v1418_v2 = vpop.f32.mrb[6].mxu0  ;;  %v1434_v3 = vpop.f32.mrb[6].mxu1 }
 0x110   : > { %v722_v4 = vmax.f32 %v614_v60, 0.0  ;;  %v738_v5 = vmax.f32 %v678_v61, 0.0  ;;  %v617_v6 = vadd.f32 %v1418_v2, %v1720_v25  ;;  %v681_v7 = vadd.f32 %v1434_v3, %v1720_v25  ;;  %v608_v8 = vpop.f32.mrb[7].mxu0  ;;  %v672_v9 = vpop.f32.mrb[7].mxu1 }
 0x111   : > { %v720_v10 = vmax.f32 %v606_v0, 0.0  ;;  %v736_v11 = vmax.f32 %v670_v1, 0.0  ;;  %v609_v12 = vadd.f32 %v1720_v25, %v608_v8  ;;  %v673_v13 = vadd.f32 %v1720_v25, %v672_v9 }
 0x112   : > { %v754_v14 = vmin.f32 %v722_v4, 6.0  ;;  %v770_v15 = vmin.f32 %v738_v5, 6.0  ;;  %v723_v16 = vmax.f32 %v617_v6, 0.0  ;;  %v739_v17 = vmax.f32 %v681_v7, 0.0 }
 0x113   : > { %v752_v18 = vmin.f32 %v720_v10, 6.0  ;;  %v768_v19 = vmin.f32 %v736_v11, 6.0  ;;  %v721_v20 = vmax.f32 %v609_v12, 0.0  ;;  %v737_v21 = vmax.f32 %v673_v13, 0.0 }
 0x114   : > { %786 = vst [vmem:[#allocation2 + $0x210] sm:$0xff] %v754_v14  ;;  %803 = vst [vmem:[#allocation2 + $0x100] sm:$0xff] %v770_v15  ;;  %v755_v22 = vmin.f32 %v723_v16, 6.0  ;;  %v771_v23 = vmin.f32 %v739_v17, 6.0 }
 0x115   : > { %784 = vst [vmem:[#allocation2 + $0x1f0] sm:$0xff] %v752_v18  ;;  %801 = vst [vmem:[#allocation2 + $0xe0] sm:$0xff] %v768_v19  ;;  %v753_v24 = vmin.f32 %v721_v20, 6.0  ;;  %v769_v26 = vmin.f32 %v737_v21, 6.0  ;;  %v1421_v27 = vpop.f32.mrb[8].mxu0  ;;  %v1437_v28 = vpop.f32.mrb[8].mxu1 }
 0x116   : > { %787 = vst [vmem:[#allocation2 + $0x220] sm:$0xff] %v755_v22  ;;  %804 = vst [vmem:[#allocation2 + $0x110] sm:$0xff] %v771_v23  ;;  %v630_v29 = vadd.f32 %v1421_v27, %v1720_v25  ;;  %v694_v30 = vadd.f32 %v1437_v28, %v1720_v25  ;;  %v621_v31 = vpop.f32.mrb[9].mxu0  ;;  %v685_v32 = vpop.f32.mrb[9].mxu1 }
 0x117   : > { %785 = vst [vmem:[#allocation2 + $0x200] sm:$0xff] %v753_v24  ;;  %802 = vst [vmem:[#allocation2 + $0xf0] sm:$0xff] %v769_v26  ;;  %v622_v33 = vadd.f32 %v1720_v25, %v621_v31  ;;  %v686_v34 = vadd.f32 %v1720_v25, %v685_v32  ;;  %v1422_v35 = vpop.f32.mrb[10].mxu0  ;;  %v1438_v36 = vpop.f32.mrb[10].mxu1 }
 0x118   : > { %v726_v37 = vmax.f32 %v630_v29, 0.0  ;;  %v742_v38 = vmax.f32 %v694_v30, 0.0  ;;  %v633_v39 = vadd.f32 %v1422_v35, %v1720_v25  ;;  %v697_v40 = vadd.f32 %v1438_v36, %v1720_v25  ;;  %v624_v41 = vpop.f32.mrb[11].mxu0  ;;  %v688_v42 = vpop.f32.mrb[11].mxu1 }
 0x119   : > { %v724_v43 = vmax.f32 %v622_v33, 0.0  ;;  %v740_v44 = vmax.f32 %v686_v34, 0.0  ;;  %v625_v45 = vadd.f32 %v1720_v25, %v624_v41  ;;  %v689_v46 = vadd.f32 %v1720_v25, %v688_v42 }
 0x11a   : > { %v758_v47 = vmin.f32 %v726_v37, 6.0  ;;  %v774_v48 = vmin.f32 %v742_v38, 6.0  ;;  %v727_v49 = vmax.f32 %v633_v39, 0.0  ;;  %v743_v50 = vmax.f32 %v697_v40, 0.0 }
 0x11b   : > { %v756_v51 = vmin.f32 %v724_v43, 6.0  ;;  %v772_v52 = vmin.f32 %v740_v44, 6.0  ;;  %v725_v53 = vmax.f32 %v625_v45, 0.0  ;;  %v741_v54 = vmax.f32 %v689_v46, 0.0 }
 0x11c   : > { %790 = vst [vmem:[#allocation2 + $0x141] sm:$0xff] %v758_v47  ;;  %808 = vst [vmem:[#allocation2 + $0x31] sm:$0xff] %v774_v48  ;;  %v759_v55 = vmin.f32 %v727_v49, 6.0  ;;  %v775_v56 = vmin.f32 %v743_v50, 6.0 }
 0x11d   : > { %788 = vst [vmem:[#allocation2 + $0x121] sm:$0xff] %v756_v51  ;;  %806 = vst [vmem:[#allocation2 + $0x11] sm:$0xff] %v772_v52  ;;  %v757_v57 = vmin.f32 %v725_v53, 6.0  ;;  %v773_v58 = vmin.f32 %v741_v54, 6.0  ;;  %v1425_v59 = vpop.f32.mrb[12].mxu0  ;;  %v1441_v60 = vpop.f32.mrb[12].mxu1 }
 0x11e   : > { %791 = vst [vmem:[#allocation2 + $0x151] sm:$0xff] %v759_v55  ;;  %809 = vst [vmem:[#allocation2 + $0x41] sm:$0xff] %v775_v56  ;;  %v646_v61 = vadd.f32 %v1425_v59, %v1720_v25  ;;  %v710_v62 = vadd.f32 %v1441_v60, %v1720_v25  ;;  %v637_v63 = vpop.f32.mrb[13].mxu0  ;;  %v701_v0 = vpop.f32.mrb[13].mxu1 }
 0x11f   : > { %789 = vst [vmem:[#allocation2 + $0x131] sm:$0xff] %v757_v57  ;;  %807 = vst [vmem:[#allocation2 + $0x21] sm:$0xff] %v773_v58  ;;  %v638_v1 = vadd.f32 %v1720_v25, %v637_v63  ;;  %v702_v2 = vadd.f32 %v1720_v25, %v701_v0  ;;  %v1426_v3 = vpop.f32.mrb[14].mxu0  ;;  %v1442_v4 = vpop.f32.mrb[14].mxu1 }
 0x120   : > { %v730_v5 = vmax.f32 %v646_v61, 0.0  ;;  %v746_v6 = vmax.f32 %v710_v62, 0.0  ;;  %v649_v7 = vadd.f32 %v1426_v3, %v1720_v25  ;;  %v713_v8 = vadd.f32 %v1442_v4, %v1720_v25  ;;  %v640_v9 = vpop.f32.mrb[15].mxu0  ;;  %v704_v10 = vpop.f32.mrb[15].mxu1 }
 0x121   : > { %v728_v11 = vmax.f32 %v638_v1, 0.0  ;;  %v744_v12 = vmax.f32 %v702_v2, 0.0  ;;  %v641_v13 = vadd.f32 %v1720_v25, %v640_v9  ;;  %v705_v14 = vadd.f32 %v1720_v25, %v704_v10 }
 0x122   : > { %v762_v15 = vmin.f32 %v730_v5, 6.0  ;;  %v778_v16 = vmin.f32 %v746_v6, 6.0  ;;  %v731_v17 = vmax.f32 %v649_v7, 0.0  ;;  %v747_v18 = vmax.f32 %v713_v8, 0.0 }
 0x123   : > { %v760_v19 = vmin.f32 %v728_v11, 6.0  ;;  %v776_v20 = vmin.f32 %v744_v12, 6.0  ;;  %v729_v21 = vmax.f32 %v641_v13, 0.0  ;;  %v745_v22 = vmax.f32 %v705_v14, 0.0 }
 0x124   : > { %794 = vst [vmem:[#allocation2 + $0x181] sm:$0xff] %v762_v15  ;;  %812 = vst [vmem:[#allocation2 + $0x71] sm:$0xff] %v778_v16  ;;  %v763_v23 = vmin.f32 %v731_v17, 6.0  ;;  %v779_v24 = vmin.f32 %v747_v18, 6.0 }
 0x125   : > { %792 = vst [vmem:[#allocation2 + $0x161] sm:$0xff] %v760_v19  ;;  %810 = vst [vmem:[#allocation2 + $0x51] sm:$0xff] %v776_v20  ;;  %v761_v26 = vmin.f32 %v729_v21, 6.0  ;;  %v777_v27 = vmin.f32 %v745_v22, 6.0 }
 0x126   : > { %795 = vst [vmem:[#allocation2 + $0x191] sm:$0xff] %v763_v23  ;;  %813 = vst [vmem:[#allocation2 + $0x81] sm:$0xff] %v779_v24 }
 0x127   : > { %793 = vst [vmem:[#allocation2 + $0x171] sm:$0xff] %v761_v26  ;;  %811 = vst [vmem:[#allocation2 + $0x61] sm:$0xff] %v777_v27 }
 0x128 PF: > { %v1544_v25 = vld [vmem:[%s1901_s5] sm:$0xff]   ;;  %v825_v28 = vlaneseq  ;;  %v1545_v29 = vld [vmem:[%s1901_s5 + $0x8] sm:$0xff]   ;;  %s1340_s8 = sshll.u32 %s1574_s24, 6  ;;  %v1546_v31 = vld [vmem:[%s1901_s5 + $0x10] sm:$0xff]  }
 0x129   : > { %1443 = vmatprep.subr.bf16.mxu0 %v1544_v25  ;;  %v1547_v36 = vld [vmem:[%s1901_s5 + $0x18] sm:$0xff]   ;;  %v815_v37 = vld [vmem:[%s1899_s3] sm:$0xf]  ;;  %s1777_s15 = scalar_lea.vmem [#allocation2], %s1340_s8  ;;  %v1790_v46 = vld [vmem:[%s1899_s3 + $0x4] sm:$0x1] }
 0x12a   : > { %v1761_v30 = vshrl.u32 %v825_v28, 7  ;;  %1444 = vmatpush3.bf16.msra.mxu0 %v1544_v25  ;;  %v817_v39 = vunpack.c.l.bf16 %v815_v37  ;;  %v1548_v53 = vld [vmem:[%s1901_s5 + $0x20] sm:$0xff]   ;;  %v818_v3 = vunpack.c.l.bf16 %v1790_v46  ;;  %v1549_v14 = vld [vmem:[%s1901_s5 + $0x28] sm:$0xff]  }
 0x12b   : > { %1445 = vmatprep.subr.bf16.mxu0 %v1545_v29 }
 0x12c   : > { %v827_v32 = vsub.s32 0, %v1761_v30  ;;  %v846_v33 = vsub.s32 1, %v1761_v30  ;;  %v862_v34 = vsub.s32 2, %v1761_v30  ;;  %v881_v35 = vsub.s32 3, %v1761_v30 }
 0x12d   : > { %v900_v38 = vsub.s32 4, %v1761_v30  ;;  %v916_v41 = vsub.s32 5, %v1761_v30  ;;  %v935_v42 = vsub.s32 6, %v1761_v30  ;;  %v954_v59 = vsub.s32 7, %v1761_v30 }
 0x12e   : > { %1446 = vmatpush3.bf16.msra.mxu0 %v1545_v29  ;;  %v821_v40 = vld [vmem:[%s1777_s15] sm:$0xff]  ;;  %v822_v43 = vld [vmem:[%s1777_s15 + $0x10] sm:$0xff]  ;;  %v828_v47 = vrot.slane %v817_v39, %v827_v32  ;;  %v847_v48 = vrot.slane %v817_v39, %v846_v33  ;;  %v863_v51 = vrot.slane %v817_v39, %v862_v34  ;;  %v1798_v52 = vrot.slane %v817_v39, %v881_v35 }
 0x12f   : > { %1447 = vmatprep.subr.bf16.mxu0 %v1546_v31  ;;  %v1287_v44 = vld [vmem:[%s1777_s15 + $0x90] sm:$0xff]  ;;  %v1785_v45 = vld [vmem:[%s1777_s15 + $0xa0] sm:$0xff]  ;;  %v1805_v56 = vrot.slane %v817_v39, %v900_v38  ;;  %v1807_v57 = vrot.slane %v817_v39, %v916_v41  ;;  %v1809_v58 = vrot.slane %v817_v39, %v935_v42  ;;  %v1830_v18 = vrot.slane %v817_v39, %v954_v59 }
 0x130   : > { %v856_v49 = vld [vmem:[%s1777_s15 + $0x1] sm:$0xff]  ;;  %v1796_v50 = vld [vmem:[%s1777_s15 + $0x11] sm:$0xff]  ;;  %v829_v60 = vmul.f32 %v828_v47, %v821_v40  ;;  %v830_v61 = vmul.f32 %v828_v47, %v822_v43  ;;  %v848_v62 = vmul.f32 %v1287_v44, %v847_v48  ;;  %v849_v63 = vmul.f32 %v1785_v45, %v847_v48 }
 0x131   : > { %v1293_v54 = vld [vmem:[%s1777_s15 + $0x120] sm:$0xff]  ;;  %v1294_v55 = vld [vmem:[%s1777_s15 + $0x130] sm:$0xff]  ;;  %v864_v4 = vmul.f32 %v863_v51, %v856_v49  ;;  %v865_v5 = vmul.f32 %v863_v51, %v1796_v50  ;;  %v937_v24 = vmul.f32 %v1809_v58, %v822_v43  ;;  %v956_v40 = vmul.f32 %v1785_v45, %v1830_v18 }
 0x132   : > { %1448 = vmatpush3.bf16.msra.mxu0 %v1546_v31  ;;  %v1299_v0 = vld [vmem:[%s1777_s15 + $0x1b0] sm:$0xff]  ;;  %v1300_v1 = vld [vmem:[%s1777_s15 + $0x1c0] sm:$0xff]  ;;  %v852_v7 = vadd.f32 %v848_v62, %v829_v60  ;;  %v853_v8 = vadd.f32 %v849_v63, %v830_v61  ;;  %v883_v9 = vmul.f32 %v1293_v54, %v1798_v52  ;;  %v884_v10 = vmul.f32 %v1294_v55, %v1798_v52  ;;  %v1551_v62 = vld [vmem:[%s1901_s5 + $0x38] sm:$0xff]  }
 0x133   : > { %1449 = vmatprep.subr.bf16.mxu0 %v1547_v36  ;;  %v1303_v2 = vld [vmem:[%s1777_s15 + $0x121] sm:$0xff]  ;;  %v1304_v6 = vld [vmem:[%s1777_s15 + $0x131] sm:$0xff]  ;;  %v902_v15 = vmul.f32 %v1299_v0, %v1805_v56  ;;  %v903_v16 = vmul.f32 %v1300_v1, %v1805_v56  ;;  %v971_v41 = vrot.slane %v818_v3, %v827_v32 }
 0x134   : > { %v1310_v11 = vld [vmem:[%s1777_s15 + $0x20] sm:$0xff]  ;;  %v1316_v12 = vld [vmem:[%s1777_s15 + $0xb0] sm:$0xff]  ;;  %v918_v17 = vmul.f32 %v1303_v2, %v1807_v57  ;;  %v868_v21 = vadd.f32 %v864_v4, %v852_v7  ;;  %v869_v22 = vadd.f32 %v865_v5, %v853_v8  ;;  %v919_v23 = vmul.f32 %v1304_v6, %v1807_v57 }
 0x135   : > { %v824_v13 = vld [vmem:[%s1777_s15 + $0x30] sm:$0xff]  ;;  %v1320_v19 = vld [vmem:[%s1777_s15 + $0x21] sm:$0xff]  ;;  %v938_v27 = vmul.f32 %v1310_v11, %v1809_v58  ;;  %v831_v25 = vmul.f32 %v1310_v11, %v828_v47  ;;  %v850_v29 = vmul.f32 %v1316_v12, %v847_v48  ;;  %v957_v54 = vmul.f32 %v1316_v12, %v1830_v18  ;;  %v1323_v12 = vld [vmem:[%s1900_s4] ss:$0 sm:$0xff] }
 0x136   : > { %1450 = vmatpush3.bf16.msra.mxu0 %v1547_v36  ;;  %v1290_v20 = vld [vmem:[%s1777_s15 + $0xc0] sm:$0xff]  ;;  %v1837_v26 = vld [vmem:[%s1777_s15 + $0x31] sm:$0xff]  ;;  %v832_v28 = vmul.f32 %v828_v47, %v824_v13  ;;  %v887_v33 = vadd.f32 %v883_v9, %v868_v21  ;;  %v888_v34 = vadd.f32 %v884_v10, %v869_v22  ;;  %v866_v36 = vmul.f32 %v1320_v19, %v863_v51 }
 0x137   : > { %1451 = vmatprep.subr.bf16.mxu0 %v1548_v53  ;;  %v1295_v31 = vld [vmem:[%s1777_s15 + $0x140] sm:$0xff]  ;;  %v851_v35 = vmul.f32 %v1290_v20, %v847_v48  ;;  %v1296_v37 = vld [vmem:[%s1777_s15 + $0x150] sm:$0xff]  ;;  %v854_v42 = vadd.f32 %v850_v29, %v831_v25  ;;  %v867_v43 = vmul.f32 %v863_v51, %v1837_v26  ;;  %v972_v63 = vmul.f32 %v971_v41, %v1796_v50 }
 0x138   : > { %v1301_v38 = vld [vmem:[%s1777_s15 + $0x1d0] sm:$0xff]  ;;  %v1302_v44 = vld [vmem:[%s1777_s15 + $0x1e0] sm:$0xff]  ;;  %v906_v46 = vadd.f32 %v902_v15, %v887_v33  ;;  %v907_v47 = vadd.f32 %v903_v16, %v888_v34  ;;  %v885_v49 = vmul.f32 %v1295_v31, %v1798_v52  ;;  %v886_v59 = vmul.f32 %v1296_v37, %v1798_v52 }
 0x139   : > { %v1550_v39 = vld [vmem:[%s1901_s5 + $0x30] sm:$0xff]   ;;  %v855_v48 = vadd.f32 %v851_v35, %v832_v28  ;;  %v870_v55 = vadd.f32 %v866_v36, %v854_v42  ;;  %v904_v45 = vmul.f32 %v1301_v38, %v1805_v56  ;;  %v905_v61 = vmul.f32 %v1302_v44, %v1805_v56  ;;  %v1312_v2 = vld [vmem:[%s1777_s15 + $0x40] sm:$0xff] }
 0x13a   : > { %1452 = vmatpush3.bf16.msra.mxu0 %v1548_v53  ;;  %v1305_v53 = vld [vmem:[%s1777_s15 + $0x141] sm:$0xff]  ;;  %v1306_v30 = vld [vmem:[%s1777_s15 + $0x151] sm:$0xff]  ;;  %v922_v32 = vadd.f32 %v918_v17, %v906_v46  ;;  %v923_v60 = vadd.f32 %v919_v23, %v907_v47  ;;  %v973_v0 = vmul.f32 %v1320_v19, %v971_v41  ;;  %v939_v56 = vmul.f32 %v1809_v58, %v824_v13 }
 0x13b   : > { %1453 = vmatprep.subr.bf16.mxu0 %v1549_v14  ;;  %v871_v51 = vadd.f32 %v867_v43, %v855_v48  ;;  %v889_v1 = vadd.f32 %v885_v49, %v870_v55  ;;  %v920_v52 = vmul.f32 %v1305_v53, %v1807_v57  ;;  %v921_v6 = vmul.f32 %v1306_v30, %v1807_v57  ;;  %v1318_v8 = vld [vmem:[%s1777_s15 + $0xd0] sm:$0xff]  ;;  %v1322_v16 = vld [vmem:[%s1777_s15 + $0x41] sm:$0xff]  ;;  %v1324_v43 = vld [vmem:[%s1902_s6] ss:$0 sm:$0xff] }
 0x13c   : > { %v941_v3 = vadd.f32 %v937_v24, %v922_v32  ;;  %v942_v4 = vadd.f32 %v938_v27, %v923_v60  ;;  %v940_v50 = vmul.f32 %v1312_v2, %v1809_v58  ;;  %v958_v15 = vmul.f32 %v1290_v20, %v1830_v18 }
 0x13d   : > { %v890_v5 = vadd.f32 %v886_v59, %v871_v51  ;;  %v908_v7 = vadd.f32 %v904_v45, %v889_v1  ;;  %v959_v13 = vmul.f32 %v1318_v8, %v1830_v18  ;;  %v974_v22 = vmul.f32 %v971_v41, %v1837_v26 }
 0x13e   : > { %1454 = vmatpush3.bf16.msra.mxu0 %v1549_v14  ;;  %v960_v9 = vadd.f32 %v956_v40, %v941_v3  ;;  %v961_v10 = vadd.f32 %v957_v54, %v942_v4  ;;  %v975_v27 = vmul.f32 %v1322_v16, %v971_v41 }
 0x13f   : > { %1455 = vmatprep.subr.bf16.mxu0 %v1550_v39  ;;  %v909_v11 = vadd.f32 %v905_v61, %v890_v5  ;;  %v924_v14 = vadd.f32 %v920_v52, %v908_v7 }
 0x140   : > { %v976_v57 = vadd.f32 %v972_v63, %v960_v9  ;;  %v977_v17 = vadd.f32 %v973_v0, %v961_v10 }
 0x141   : > { %v925_v19 = vadd.f32 %v921_v6, %v909_v11  ;;  %v943_v21 = vadd.f32 %v939_v56, %v924_v14 }
 0x142   : > { %1456 = vmatpush3.bf16.msra.mxu0 %v1550_v39  ;;  %v987_v23 = vadd.f32 %v1323_v12, %v976_v57  ;;  %v988_v58 = vadd.f32 %v1323_v12, %v977_v17 }
 0x143   : > { %1457 = vmatprep.subr.bf16.mxu0 %v1551_v62  ;;  %v944_v24 = vadd.f32 %v940_v50, %v925_v19  ;;  %v962_v25 = vadd.f32 %v958_v15, %v943_v21 }
 0x144   : > { %v991_v28 = vmax.f32 %v987_v23, 0.0  ;;  %v992_v29 = vmax.f32 %v988_v58, 0.0 }
 0x145   : > { %v963_v31 = vadd.f32 %v959_v13, %v944_v24  ;;  %v978_v33 = vadd.f32 %v974_v22, %v962_v25 }
 0x146   : > { %1458 = vmatpush3.bf16.msra.mxu0 %v1551_v62  ;;  %v995_v20 = vmin.f32 %v991_v28, 6.0  ;;  %v996_v34 = vmin.f32 %v992_v29, 6.0 }
 0x147   : > { %v979_v35 = vadd.f32 %v975_v27, %v963_v31  ;;  %v989_v36 = vadd.f32 %v1323_v12, %v978_v33 }
 0x148   : > { %v999_v37 = vpack.c.bf16 %v996_v34, %v995_v20 }
 0x149   : > { %v990_v38 = vadd.f32 %v1323_v12, %v979_v35  ;;  %v993_v18 = vmax.f32 %v989_v36, 0.0 }
 0x14a   : > { %1459 = vmatprep.mubr.bf16.mxu0 %v999_v37 }
 0x14b   : > { %v994_v39 = vmax.f32 %v990_v38, 0.0  ;;  %v997_v26 = vmin.f32 %v993_v18, 6.0 }
 0x14d   : > { %v998_v40 = vmin.f32 %v994_v39, 6.0 }
 0x14f   : > { %v1000_v42 = vpack.c.bf16 %v998_v40, %v997_v26 }
 0x151   : > { %1460 = vmatmul.mubr.bf16.vlgmr.msra.gmra.mrb[0].mxu0 %v1000_v42 }
 0x224   : > { %v1461_v41 = vpop.f32.mrb[0].mxu0 }
 0x225   : > { %v1106_v44 = vpop.f32.mrb[1].mxu0  ;;  %v1115_v47 = vadd.f32 %v1461_v41, %v1324_v43 }
 0x226   : > { %v1462_v46 = vpop.f32.mrb[2].mxu0  ;;  %v1107_v53 = vadd.f32 %v1324_v43, %v1106_v44 }
 0x227   : > { %v1118_v48 = vadd.f32 %v1462_v46, %v1324_v43  ;;  %v1109_v49 = vpop.f32.mrb[3].mxu0 }
 0x228   : > { %v1110_v54 = vadd.f32 %v1324_v43, %v1109_v49 }
 0x229   : > { %v1358_v55 = vpack.c.bf16 %v1118_v48, %v1115_v47 }
 0x22a   : > { %v1353_v59 = vpack.c.bf16 %v1110_v54, %v1107_v53 }
 0x22b   : > { %1360 = vst [vmem:[%s1674_s18 + $0x8] sm:$0xff] %v1358_v55  }
 0x22c   : > { %1354 = vst [vmem:[%s1674_s18] sm:$0xff] %v1353_v59  }
 0x22d PF: > { %s17_s28 = sadd.s32 1, %s1590_s28   ;;  %s1904_s24 = smov %s1582_s26 }
 0x22e   : > { %p14_p8 = scmp.ge.s32.totalorder %s17_s28, 6   ;;  %s1905_s25 = smov %s1586_s27 }
 0x22f   : > { %s1906_s26 = smov %s1909_s29  ;;  %s1907_s27 = smov %s1913_s30 }
 0x230   :  { %16 = sbr.rel (!%p14_p8) target bundleno = 3 (0x3), region = 95 }

// kernel: _stage_forward.3
= control target key start
LH: loop header
LB: loop body
LE: loop exit
PB: predicated region body
PF: predicated region fallthrough
CT: control target
= control target key end

     0   :  { %s1281_s24 = smov 0   ;;  %s1283_s25 = smov 0   ;;  %s1464_s0 = inlined_call_operand.vmem [shape: bf16[2,64,128], index: 0, kind: input, shape index: {}]   ;;  %s1465_s1 = inlined_call_operand.vmem [shape: bf16[128,128], index: 1, kind: input, shape index: {}]   ;;  %s1466_s2 = inlined_call_operand.vmem [shape: f32[1,128], index: 2, kind: input, shape index: {}]   ;;  %s1467_s3 = inlined_call_operand.vmem [shape: bf16[9,128], index: 3, kind: input, shape index: {}]   ;;  %s1468_s4 = inlined_call_operand.vmem [shape: f32[1,128], index: 4, kind: input, shape index: {}]   ;;  %s1469_s5 = inlined_call_operand.vmem [shape: bf16[128,128], index: 5, kind: input, shape index: {}]   ;;  %s1470_s6 = inlined_call_operand.vmem [shape: f32[1,128], index: 6, kind: input, shape index: {}]   ;;  %s1471_s7 = inlined_call_operand.vmem [shape: bf16[2,64,128], index: 7, kind: output, shape index: {}]  }
   0x1   :  { %s1285_s26 = smov 0   ;;  %s1287_s27 = smov 0  }
   0x2   :  { %s1289_s28 = smov 0  }
   0x3 LB: > { %s26_s29 = sadd.s32 1, %s1230_s26  ;;  %s29_s30 = sadd.s32 1, %s1234_s27  ;;  %s1238_s28 = sphi %s1289_s28, %s17_s28   ;;  %s1234_s27 = sphi %s1287_s27, %s1475_s27   ;;  %s1230_s26 = sphi %s1285_s26, %s1474_s26   ;;  %s1226_s25 = sphi %s1283_s25, %s1473_s25   ;;  %s1222_s24 = sphi %s1281_s24, %s1472_s24  }
   0x4   : > { %p27_p0 = scmp.ge.s32.totalorder %s26_s29, 2  ;;  %p960_p1 = scmp.ge.s32.totalorder %s1238_s28, 1 }
   0x5   : > { %p251_p2 = scmp.lt.s32.totalorder %s1238_s28, 5 }
   0x6   : > { %s1477_s29 = smov (%p27_p0, %s26_s29), 0  ;;  %s1479_s30 = smov (!%p27_p0, %s29_s30), %s1234_s27 }
   0x7   : > { %p252_p3 = pnand %p960_p1, %p251_p2  ;;  %p31_p4 = scmp.ge.s32.totalorder %s1479_s30, 2 }
   0x8   : > { %p287_p5 = scmp.lt.s32.totalorder (!%p252_p3), %s1226_s25, 1  ;;  %s963_s8 = sshll.u32 (!%p252_p3), %s1222_s24, 2 }
   0x9   : > { %s1481_s30 = smov (%p31_p4, %s1479_s30), 0  ;;  %255 = sbr.rel (%p252_p3) target bundleno = 533 (0x215), region = 48 }
   0xa   : > { %p295_p6 = scmp.lt.s32.totalorder (!%p252_p3), %s963_s8, 7  ;;  %p966_p7 = scmp.ne.s32.totalorder (!%p252_p3), %s1222_s24, 0 }
  0x10   : > { %s1483_s25 = smov (!%p287_p5, %s1226_s25), 1  ;;  %s1485_s8 = smov (!%p295_p6, %s963_s8), 7 }
  0x11   : > { %s1028_s9 = sshll.u32 %s1483_s25, 5  ;;  %s964_s10 = sshll.u32 %s1483_s25, 3  ;;  %v1180_v0 = vld [vmem:[%s1465_s1] sm:$0xff] (!%p966_p7)   ;;  %v1240_v1 = vmov (!%p966_p7), 0.0   ;;  %v1181_v2 = vld [vmem:[%s1465_s1 + $0x8] sm:$0xff] (!%p966_p7)   ;;  %v1182_v3 = vld [vmem:[%s1465_s1 + $0x10] sm:$0xff] (!%p966_p7)  }
  0x12   : > { %s1317_s13 = scalar_lea.vmem %s1464_s0, %s1028_s9  ;;  %s298_s14 = sadd.s32 %s964_s10, %s1485_s8  ;;  %307 = vst [vmem:[#allocation2] sm:$0xff] (!%p966_p7), %v1240_v1  ;;  %308 = vst [vmem:[#allocation2 + $0x8] sm:$0x3] (!%p966_p7), %v1240_v1  ;;  %1079 = vmatprep.subr.bf16.mxu0 (!%p966_p7), %v1180_v0  ;;  %1123 = vmatprep.subr.bf16.mxu1 (!%p966_p7), %v1180_v0  ;;  %v1183_v4 = vld [vmem:[%s1465_s1 + $0x18] sm:$0xff] (!%p966_p7)   ;;  %v1184_v7 = vld [vmem:[%s1465_s1 + $0x20] sm:$0xff] (!%p966_p7)  }
  0x13   : > { %s965_s15 = sshll.u32 %s298_s14, 2  ;;  %306 = sbr.rel (%p966_p7) target bundleno = 272 (0x110), region = 52  ;;  %310 = vst [vmem:[#allocation2 + $0x90] sm:$0xff] (!%p966_p7), %v1240_v1  ;;  %311 = vst [vmem:[#allocation2 + $0x98] sm:$0x3] (!%p966_p7), %v1240_v1  ;;  %1080 = vmatpush3.bf16.msra.mxu0 (!%p966_p7), %v1180_v0  ;;  %1131 = vmatpush3.bf16.msra.mxu1 (!%p966_p7), %v1180_v0  ;;  %v1188_v5 = vld [vmem:[%s1317_s13] sm:$0xff] (!%p966_p7)  }
  0x14   : > { %s1322_s18 = scalar_lea.vmem %s1471_s7, %s965_s15  ;;  %313 = vst [vmem:[#allocation2 + $0x10] sm:$0x1] (!%p966_p7), %v1240_v1  ;;  %314 = vst [vmem:[#allocation2 + $0x20] sm:$0x1] (!%p966_p7), %v1240_v1  ;;  %1081 = vmatprep.subr.bf16.mxu0 (!%p966_p7), %v1181_v2  ;;  %1124 = vmatprep.subr.bf16.mxu1 (!%p966_p7), %v1181_v2  ;;  %v1189_v6 = vld [vmem:[%s1317_s13 + $0x10] sm:$0xff] (!%p966_p7)   ;;  %v1185_v8 = vld [vmem:[%s1465_s1 + $0x28] sm:$0xff] (!%p966_p7)  }
  0x15   : > { %315 = vst [vmem:[#allocation2 + $0x30] sm:$0x1] (!%p966_p7), %v1240_v1  ;;  %316 = vst [vmem:[#allocation2 + $0x40] sm:$0x1] (!%p966_p7), %v1240_v1  ;;  %1095 = vmatprep.mubr.bf16.mxu0 (!%p966_p7), %v1188_v5  ;;  %1099 = vmatprep.mubr.bf16.mxu1 (!%p966_p7), %v1189_v6  ;;  %v1186_v9 = vld [vmem:[%s1465_s1 + $0x30] sm:$0xff] (!%p966_p7)   ;;  %v1187_v10 = vld [vmem:[%s1465_s1 + $0x38] sm:$0xff] (!%p966_p7)  }
  0x16   : > { %317 = vst [vmem:[#allocation2 + $0x50] sm:$0x1] (!%p966_p7), %v1240_v1  ;;  %318 = vst [vmem:[#allocation2 + $0x60] sm:$0x1] (!%p966_p7), %v1240_v1  ;;  %v1190_v11 = vld [vmem:[%s1317_s13 + $0x8] sm:$0xff] (!%p966_p7)   ;;  %v1191_v12 = vld [vmem:[%s1317_s13 + $0x18] sm:$0xff] (!%p966_p7)  }
  0x17   : > { %319 = vst [vmem:[#allocation2 + $0x70] sm:$0x1] (!%p966_p7), %v1240_v1  ;;  %320 = vst [vmem:[#allocation2 + $0x80] sm:$0x1] (!%p966_p7), %v1240_v1  ;;  %1082 = vmatpush3.bf16.msra.mxu0 (!%p966_p7), %v1181_v2  ;;  %1132 = vmatpush3.bf16.msra.mxu1 (!%p966_p7), %v1181_v2  ;;  %v967_v13 = vld [vmem:[%s1466_s2] ss:$0 sm:$0xff] (!%p966_p7) }
  0x18   : > { %323 = vst [vmem:[#allocation2 + $0x19] sm:$0x1] (!%p966_p7), %v1240_v1  ;;  %324 = vst [vmem:[#allocation2 + $0x29] sm:$0x1] (!%p966_p7), %v1240_v1  ;;  %1083 = vmatprep.subr.bf16.mxu0 (!%p966_p7), %v1182_v3  ;;  %1125 = vmatprep.subr.bf16.mxu1 (!%p966_p7), %v1182_v3 }
  0x19   : > { %325 = vst [vmem:[#allocation2 + $0x39] sm:$0x1] (!%p966_p7), %v1240_v1  ;;  %326 = vst [vmem:[#allocation2 + $0x49] sm:$0x1] (!%p966_p7), %v1240_v1 }
  0x1a   : > { %327 = vst [vmem:[#allocation2 + $0x59] sm:$0x1] %v1240_v1  ;;  %328 = vst [vmem:[#allocation2 + $0x69] sm:$0x1] %v1240_v1 }
  0x1b   : > { %329 = vst [vmem:[#allocation2 + $0x79] sm:$0x1] %v1240_v1  ;;  %330 = vst [vmem:[#allocation2 + $0x89] sm:$0x1] %v1240_v1  ;;  %1084 = vmatpush3.bf16.msra.mxu0 %v1182_v3  ;;  %1133 = vmatpush3.bf16.msra.mxu1 %v1182_v3 }
  0x1c   : > { %312 = vst [vmem:[#allocation2] sm:$0x1] %v1240_v1  ;;  %321 = vst [vmem:[#allocation2 + $0x90] sm:$0x1] %v1240_v1  ;;  %1085 = vmatprep.subr.bf16.mxu0 %v1183_v4  ;;  %1126 = vmatprep.subr.bf16.mxu1 %v1183_v4 }
  0x1d   : > { %322 = vst [vmem:[#allocation2 + $0x9] sm:$0x1] %v1240_v1  ;;  %331 = vst [vmem:[#allocation2 + $0x99] sm:$0x1] %v1240_v1 }
  0x1f   : > { %1086 = vmatpush3.bf16.msra.mxu0 %v1183_v4  ;;  %1134 = vmatpush3.bf16.msra.mxu1 %v1183_v4 }
  0x20   : > { %1087 = vmatprep.subr.bf16.mxu0 %v1184_v7  ;;  %1127 = vmatprep.subr.bf16.mxu1 %v1184_v7 }
  0x23   : > { %1088 = vmatpush3.bf16.msra.mxu0 %v1184_v7  ;;  %1135 = vmatpush3.bf16.msra.mxu1 %v1184_v7 }
  0x24   : > { %1089 = vmatprep.subr.bf16.mxu0 %v1185_v8  ;;  %1128 = vmatprep.subr.bf16.mxu1 %v1185_v8 }
  0x27   : > { %1090 = vmatpush3.bf16.msra.mxu0 %v1185_v8  ;;  %1136 = vmatpush3.bf16.msra.mxu1 %v1185_v8 }
  0x28   : > { %1091 = vmatprep.subr.bf16.mxu0 %v1186_v9  ;;  %1129 = vmatprep.subr.bf16.mxu1 %v1186_v9 }
  0x2b   : > { %1092 = vmatpush3.bf16.msra.mxu0 %v1186_v9  ;;  %1137 = vmatpush3.bf16.msra.mxu1 %v1186_v9 }
  0x2c   : > { %1093 = vmatprep.subr.bf16.mxu0 %v1187_v10  ;;  %1130 = vmatprep.subr.bf16.mxu1 %v1187_v10 }
  0x2f   : > { %1094 = vmatpush3.bf16.msra.mxu0 %v1187_v10  ;;  %1138 = vmatpush3.bf16.msra.mxu1 %v1187_v10 }
  0x32   : > { %1096 = vmatmul.mubr.bf16.vlgmr.msra.gmra.mrb[0].mxu0 %v1190_v11  ;;  %1100 = vmatmul.mubr.bf16.vlgmr.msra.gmra.mrb[0].mxu1 %v1191_v12 }
 0x105   : > { %v1097_v14 = vpop.f32.mrb[0].mxu0  ;;  %v1101_v15 = vpop.f32.mrb[0].mxu1 }
 0x106   : > { %v478_v16 = vadd.f32 %v1097_v14, %v967_v13  ;;  %v494_v17 = vadd.f32 %v1101_v15, %v967_v13  ;;  %v469_v18 = vpop.f32.mrb[1].mxu0  ;;  %v485_v19 = vpop.f32.mrb[1].mxu1 }
 0x107   : > { %v470_v20 = vadd.f32 %v967_v13, %v469_v18  ;;  %v486_v21 = vadd.f32 %v967_v13, %v485_v19  ;;  %v1098_v22 = vpop.f32.mrb[2].mxu0  ;;  %v1102_v23 = vpop.f32.mrb[2].mxu1 }
 0x108   : > { %v502_v24 = vmax.f32 %v478_v16, 0.0  ;;  %v506_v25 = vmax.f32 %v494_v17, 0.0  ;;  %v481_v26 = vadd.f32 %v1098_v22, %v967_v13  ;;  %v497_v27 = vadd.f32 %v1102_v23, %v967_v13  ;;  %v472_v28 = vpop.f32.mrb[3].mxu0  ;;  %v488_v29 = vpop.f32.mrb[3].mxu1 }
 0x109   : > { %v500_v30 = vmax.f32 %v470_v20, 0.0  ;;  %v504_v31 = vmax.f32 %v486_v21, 0.0  ;;  %v473_v32 = vadd.f32 %v967_v13, %v472_v28  ;;  %v489_v33 = vadd.f32 %v967_v13, %v488_v29 }
 0x10a   : > { %v510_v34 = vmin.f32 %v502_v24, 6.0  ;;  %v514_v35 = vmin.f32 %v506_v25, 6.0  ;;  %v503_v36 = vmax.f32 %v481_v26, 0.0  ;;  %v507_v37 = vmax.f32 %v497_v27, 0.0 }
 0x10b   : > { %v508_v38 = vmin.f32 %v500_v30, 6.0  ;;  %v512_v39 = vmin.f32 %v504_v31, 6.0  ;;  %v501_v40 = vmax.f32 %v473_v32, 0.0  ;;  %v505_v41 = vmax.f32 %v489_v33, 0.0 }
 0x10c   : > { %519 = vst [vmem:[#allocation2 + $0x31] sm:$0xff] %v510_v34  ;;  %523 = vst [vmem:[#allocation2 + $0x71] sm:$0xff] %v514_v35  ;;  %v511_v42 = vmin.f32 %v503_v36, 6.0  ;;  %v515_v43 = vmin.f32 %v507_v37, 6.0 }
 0x10d   : > { %517 = vst [vmem:[#allocation2 + $0x11] sm:$0xff] %v508_v38  ;;  %521 = vst [vmem:[#allocation2 + $0x51] sm:$0xff] %v512_v39  ;;  %v509_v44 = vmin.f32 %v501_v40, 6.0  ;;  %v513_v45 = vmin.f32 %v505_v41, 6.0 }
 0x10e   : > { %520 = vst [vmem:[#allocation2 + $0x41] sm:$0xff] %v511_v42  ;;  %524 = vst [vmem:[#allocation2 + $0x81] sm:$0xff] %v515_v43 }
 0x10f   : > { %518 = vst [vmem:[#allocation2 + $0x21] sm:$0xff] %v509_v44  ;;  %522 = vst [vmem:[#allocation2 + $0x61] sm:$0xff] %v513_v45 }
 0x110 PF: > { %v1192_v46 = vld [vmem:[%s1469_s5] sm:$0xff]   ;;  %v536_v47 = vlaneseq  ;;  %v1193_v48 = vld [vmem:[%s1469_s5 + $0x8] sm:$0xff]   ;;  %s1029_s9 = sshll.u32 %s1222_s24, 6  ;;  %v1194_v50 = vld [vmem:[%s1469_s5 + $0x10] sm:$0xff]   ;;  %s1032_s15 = sshll.u32 %s1222_s24, 5 }
 0x111   : > { %1103 = vmatprep.subr.bf16.mxu0 %v1192_v46  ;;  %v1195_v55 = vld [vmem:[%s1469_s5 + $0x18] sm:$0xff]   ;;  %v526_v56 = vld [vmem:[%s1467_s3] sm:$0xf]  ;;  %s1379_s17 = scalar_lea.vmem [#allocation2], %s1029_s9  ;;  %v527_v1 = vld [vmem:[%s1467_s3 + $0x4] sm:$0x1] }
 0x112   : > { %v1363_v49 = vshrl.u32 %v536_v47, 7  ;;  %1104 = vmatpush3.bf16.msra.mxu0 %v1192_v46  ;;  %v528_v58 = vunpack.c.l.bf16 %v526_v56  ;;  %v1196_v8 = vld [vmem:[%s1469_s5 + $0x20] sm:$0xff]   ;;  %v529_v17 = vunpack.c.l.bf16 %v527_v1  ;;  %v1197_v27 = vld [vmem:[%s1469_s5 + $0x28] sm:$0xff]   ;;  %s824_s16 = sshra.s32 %s1032_s15, 3 }
 0x113   : > { %1105 = vmatprep.subr.bf16.mxu0 %v1193_v48 }
 0x114   : > { %v538_v51 = vsub.s32 0, %v1363_v49  ;;  %v554_v52 = vsub.s32 1, %v1363_v49  ;;  %v570_v53 = vsub.s32 2, %v1363_v49  ;;  %v589_v54 = vsub.s32 3, %v1363_v49 }
 0x115   : > { %v605_v57 = vsub.s32 4, %v1363_v49  ;;  %v621_v60 = vsub.s32 5, %v1363_v49  ;;  %v640_v61 = vsub.s32 6, %v1363_v49  ;;  %v656_v12 = vsub.s32 7, %v1363_v49 }
 0x116   : > { %1106 = vmatpush3.bf16.msra.mxu0 %v1193_v48  ;;  %v532_v59 = vld [vmem:[%s1379_s17] sm:$0xff]  ;;  %v533_v62 = vld [vmem:[%s1379_s17 + $0x10] sm:$0xff]  ;;  %v539_v2 = vrot.slane %v528_v58, %v538_v51  ;;  %v555_v3 = vrot.slane %v528_v58, %v554_v52  ;;  %v571_v6 = vrot.slane %v528_v58, %v570_v53  ;;  %v590_v7 = vrot.slane %v528_v58, %v589_v54 }
 0x117   : > { %1107 = vmatprep.subr.bf16.mxu0 %v1194_v50  ;;  %v548_v63 = vld [vmem:[%s1379_s17 + $0x1] sm:$0xff]  ;;  %v549_v0 = vld [vmem:[%s1379_s17 + $0x11] sm:$0xff]  ;;  %v606_v9 = vrot.slane %v528_v58, %v605_v57  ;;  %v1397_v10 = vrot.slane %v528_v58, %v621_v60  ;;  %v1399_v11 = vrot.slane %v528_v58, %v640_v61  ;;  %v1411_v33 = vrot.slane %v528_v58, %v656_v12 }
 0x118   : > { %v564_v4 = vld [vmem:[%s1379_s17 + $0x2] sm:$0xff]  ;;  %v565_v5 = vld [vmem:[%s1379_s17 + $0x12] sm:$0xff]  ;;  %v540_v13 = vmul.f32 %v539_v2, %v532_v59  ;;  %v541_v14 = vmul.f32 %v539_v2, %v533_v62  ;;  %v556_v15 = vmul.f32 %v555_v3, %v548_v63  ;;  %v557_v16 = vmul.f32 %v555_v3, %v549_v0 }
 0x119   : > { %v572_v18 = vmul.f32 %v571_v6, %v564_v4  ;;  %v573_v19 = vmul.f32 %v571_v6, %v565_v5  ;;  %v985_v20 = vld [vmem:[%s1379_s17 + $0x20] sm:$0xff]  ;;  %v591_v23 = vmul.f32 %v590_v7, %v533_v62  ;;  %v999_v26 = vld [vmem:[%s1379_s17 + $0x30] sm:$0xff]  ;;  %v607_v28 = vmul.f32 %v606_v9, %v549_v0 }
 0x11a   : > { %1108 = vmatpush3.bf16.msra.mxu0 %v1194_v50  ;;  %v560_v21 = vadd.f32 %v556_v15, %v540_v13  ;;  %v561_v22 = vadd.f32 %v557_v16, %v541_v14  ;;  %v592_v24 = vmul.f32 %v985_v20, %v590_v7  ;;  %v989_v25 = vld [vmem:[%s1379_s17 + $0x21] sm:$0xff]  ;;  %v623_v31 = vmul.f32 %v1397_v10, %v565_v5  ;;  %v1003_v32 = vld [vmem:[%s1379_s17 + $0x31] sm:$0xff] }
 0x11b   : > { %1109 = vmatprep.subr.bf16.mxu0 %v1195_v55  ;;  %v608_v29 = vmul.f32 %v989_v25, %v606_v9  ;;  %v993_v30 = vld [vmem:[%s1379_s17 + $0x22] sm:$0xff]  ;;  %v642_v37 = vmul.f32 %v985_v20, %v1399_v11  ;;  %v1007_v38 = vld [vmem:[%s1379_s17 + $0x32] sm:$0xff]  ;;  %v643_v39 = vmul.f32 %v999_v26, %v1399_v11  ;;  %v542_v40 = vmul.f32 %v985_v20, %v539_v2 }
 0x11c   : > { %v576_v34 = vadd.f32 %v572_v18, %v560_v21  ;;  %v577_v35 = vadd.f32 %v573_v19, %v561_v22  ;;  %v624_v36 = vmul.f32 %v993_v30, %v1397_v10  ;;  %v543_v41 = vmul.f32 %v999_v26, %v539_v2  ;;  %v987_v47 = vld [vmem:[%s1379_s17 + $0x40] sm:$0xff]  ;;  %v1198_v48 = vld [vmem:[%s1469_s5 + $0x30] sm:$0xff]  }
 0x11d   : > { %v558_v42 = vmul.f32 %v989_v25, %v555_v3  ;;  %v559_v45 = vmul.f32 %v1003_v32, %v555_v3  ;;  %v574_v46 = vmul.f32 %v993_v30, %v571_v6  ;;  %v658_v50 = vmul.f32 %v989_v25, %v1411_v33  ;;  %v995_v0 = vld [vmem:[%s1379_s17 + $0x42] sm:$0xff]  ;;  %v1199_v3 = vld [vmem:[%s1469_s5 + $0x38] sm:$0xff]   ;;  %v1001_v12 = vld [vmem:[%s1379_s17 + $0x50] sm:$0xff] }
 0x11e   : > { %1110 = vmatpush3.bf16.msra.mxu0 %v1195_v55  ;;  %v595_v43 = vadd.f32 %v591_v23, %v576_v34  ;;  %v596_v44 = vadd.f32 %v592_v24, %v577_v35  ;;  %v673_v52 = vrot.slane %v529_v17, %v538_v51  ;;  %v575_v54 = vmul.f32 %v1007_v38, %v571_v6  ;;  %v991_v55 = vld [vmem:[%s1379_s17 + $0x41] sm:$0xff]  ;;  %v1005_v17 = vld [vmem:[%s1379_s17 + $0x51] sm:$0xff]  ;;  %v1010_v22 = vld [vmem:[%s1468_s4] ss:$0 sm:$0xff] }
 0x11f   : > { %1111 = vmatprep.subr.bf16.mxu0 %v1196_v8  ;;  %v562_v53 = vadd.f32 %v558_v42, %v542_v40  ;;  %v563_v58 = vadd.f32 %v559_v45, %v543_v41  ;;  %v593_v59 = vmul.f32 %v999_v26, %v590_v7  ;;  %v659_v60 = vmul.f32 %v1003_v32, %v1411_v33  ;;  %v1009_v25 = vld [vmem:[%s1379_s17 + $0x52] sm:$0xff]  ;;  %s1021_s17 = sshll.u32 %s824_s16, 2 }
 0x120   : > { %v611_v56 = vadd.f32 %v607_v28, %v595_v43  ;;  %v612_v57 = vadd.f32 %v608_v29, %v596_v44  ;;  %v594_v62 = vmul.f32 %v987_v47, %v590_v7  ;;  %v609_v63 = vmul.f32 %v1003_v32, %v606_v9  ;;  %s827_s19 = scalar_lea.vmem %s1317_s13, %s1021_s17 }
 0x121   : > { %v578_v61 = vadd.f32 %v574_v46, %v562_v53  ;;  %v579_v49 = vadd.f32 %v575_v54, %v563_v58  ;;  %v610_v51 = vmul.f32 %v991_v55, %v606_v9  ;;  %v674_v4 = vmul.f32 %v993_v30, %v673_v52  ;;  %v1055_v53 = vld [vmem:[%s827_s19 + $0x8] sm:$0xff]   ;;  %v1038_v54 = vld [vmem:[%s827_s19] sm:$0xff]  }
 0x122   : > { %1112 = vmatpush3.bf16.msra.mxu0 %v1196_v8  ;;  %v627_v1 = vadd.f32 %v623_v31, %v611_v56  ;;  %v628_v2 = vadd.f32 %v624_v36, %v612_v57  ;;  %v675_v5 = vmul.f32 %v1007_v38, %v673_v52  ;;  %v625_v8 = vmul.f32 %v1007_v38, %v1397_v10 }
 0x123   : > { %1113 = vmatprep.subr.bf16.mxu0 %v1197_v27  ;;  %v597_v6 = vadd.f32 %v593_v59, %v578_v61  ;;  %v598_v14 = vadd.f32 %v594_v62, %v579_v49  ;;  %v626_v15 = vmul.f32 %v995_v0, %v1397_v10  ;;  %v644_v9 = vmul.f32 %v987_v47, %v1399_v11 }
 0x124   : > { %v646_v7 = vadd.f32 %v642_v37, %v627_v1  ;;  %v647_v13 = vadd.f32 %v643_v39, %v628_v2  ;;  %v645_v21 = vmul.f32 %v1001_v12, %v1399_v11  ;;  %v660_v24 = vmul.f32 %v991_v55, %v1411_v33 }
 0x125   : > { %v613_v16 = vadd.f32 %v609_v63, %v597_v6  ;;  %v614_v20 = vadd.f32 %v610_v51, %v598_v14  ;;  %v661_v28 = vmul.f32 %v1005_v17, %v1411_v33  ;;  %v676_v30 = vmul.f32 %v995_v0, %v673_v52 }
 0x126   : > { %1114 = vmatpush3.bf16.msra.mxu0 %v1197_v27  ;;  %v662_v18 = vadd.f32 %v658_v50, %v646_v7  ;;  %v663_v19 = vadd.f32 %v659_v60, %v647_v13  ;;  %v677_v34 = vmul.f32 %v1009_v25, %v673_v52  ;;  %v1011_v52 = vld [vmem:[%s1470_s6] ss:$0 sm:$0xff]  ;;  %v1043_v57 = vunpack.c.l.bf16 %v1055_v53 }
 0x127   : > { %1115 = vmatprep.subr.bf16.mxu0 %v1198_v48  ;;  %v629_v23 = vadd.f32 %v625_v8, %v613_v16  ;;  %v630_v27 = vadd.f32 %v626_v15, %v614_v20  ;;  %v1044_v59 = vunpack.c.h.bf16 %v1055_v53  ;;  %v1039_v61 = vunpack.c.l.bf16 %v1038_v54 }
 0x128   : > { %v678_v10 = vadd.f32 %v674_v4, %v662_v18  ;;  %v679_v26 = vadd.f32 %v675_v5, %v663_v19  ;;  %v1040_v63 = vunpack.c.h.bf16 %v1038_v54 }
 0x129   : > { %v648_v29 = vadd.f32 %v644_v9, %v629_v23  ;;  %v649_v11 = vadd.f32 %v645_v21, %v630_v27 }
 0x12a   : > { %1116 = vmatpush3.bf16.msra.mxu0 %v1198_v48  ;;  %v689_v31 = vadd.f32 %v1010_v22, %v678_v10  ;;  %v690_v32 = vadd.f32 %v1010_v22, %v679_v26 }
 0x12b   : > { %1117 = vmatprep.subr.bf16.mxu0 %v1199_v3  ;;  %v664_v35 = vadd.f32 %v660_v24, %v648_v29  ;;  %v665_v38 = vadd.f32 %v661_v28, %v649_v11 }
 0x12c   : > { %v693_v36 = vmax.f32 %v689_v31, 0.0  ;;  %v694_v37 = vmax.f32 %v690_v32, 0.0 }
 0x12d   : > { %v680_v39 = vadd.f32 %v676_v30, %v664_v35  ;;  %v681_v42 = vadd.f32 %v677_v34, %v665_v38 }
 0x12e   : > { %1118 = vmatpush3.bf16.msra.mxu0 %v1199_v3  ;;  %v697_v40 = vmin.f32 %v693_v36, 6.0  ;;  %v698_v41 = vmin.f32 %v694_v37, 6.0 }
 0x12f   : > { %v691_v43 = vadd.f32 %v1010_v22, %v680_v39  ;;  %v692_v33 = vadd.f32 %v1010_v22, %v681_v42 }
 0x130   : > { %v701_v44 = vpack.c.bf16 %v698_v41, %v697_v40 }
 0x131   : > { %v695_v45 = vmax.f32 %v691_v43, 0.0  ;;  %v696_v46 = vmax.f32 %v692_v33, 0.0 }
 0x132   : > { %1119 = vmatprep.mubr.bf16.mxu0 %v701_v44 }
 0x133   : > { %v699_v47 = vmin.f32 %v695_v45, 6.0  ;;  %v700_v48 = vmin.f32 %v696_v46, 6.0 }
 0x135   : > { %v702_v50 = vpack.c.bf16 %v700_v48, %v699_v47 }
 0x137   : > { %1120 = vmatmul.mubr.bf16.vlgmr.msra.gmra.mrb[0].mxu0 %v702_v50 }
 0x20a   : > { %v1121_v55 = vpop.f32.mrb[0].mxu0 }
 0x20b   : > { %v817_v56 = vadd.f32 %v1121_v55, %v1011_v52  ;;  %v808_v58 = vpop.f32.mrb[1].mxu0 }
 0x20c   : > { %v809_v60 = vadd.f32 %v1011_v52, %v808_v58  ;;  %v1122_v62 = vpop.f32.mrb[2].mxu0 }
 0x20d   : > { %v820_v0 = vadd.f32 %v1122_v62, %v1011_v52  ;;  %v811_v1 = vpop.f32.mrb[3].mxu0  ;;  %v838_v49 = vadd.f32 %v1043_v57, %v817_v56 }
 0x20e   : > { %v812_v2 = vadd.f32 %v1011_v52, %v811_v1  ;;  %v836_v3 = vadd.f32 %v1039_v61, %v809_v60 }
 0x20f   : > { %v839_v51 = vadd.f32 %v1044_v59, %v820_v0 }
 0x210   : > { %v837_v4 = vadd.f32 %v1040_v63, %v812_v2 }
 0x211   : > { %v1053_v5 = vpack.c.bf16 %v839_v51, %v838_v49 }
 0x212   : > { %v1048_v6 = vpack.c.bf16 %v837_v4, %v836_v3 }
 0x213   : > { %1056 = vst [vmem:[%s1322_s18 + $0x8] sm:$0xff] %v1053_v5  }
 0x214   : > { %1049 = vst [vmem:[%s1322_s18] sm:$0xff] %v1048_v6  }
 0x215 PF: > { %s17_s28 = sadd.s32 1, %s1238_s28   ;;  %s1472_s24 = smov %s1230_s26 }
 0x216   : > { %p14_p8 = scmp.ge.s32.totalorder %s17_s28, 6   ;;  %s1473_s25 = smov %s1234_s27 }
 0x217   : > { %s1474_s26 = smov %s1477_s29  ;;  %s1475_s27 = smov %s1481_s30 }
 0x218   :  { %16 = sbr.rel (!%p14_p8) target bundleno = 3 (0x3), region = 88 }

</bundles_post_ra>
